<compile_context>
chip_gen: v7x
topology: tpu7x:2x2x1
jax: 0.10.0
libtpu: 0.0.40
codegen_flags: <defaults>
</compile_context>

<pallas_src>
import math

import jax
import jax.numpy as jnp
from jax.experimental import pallas as pl
from jax.experimental.pallas import tpu as pltpu


# --------------------------------------------------------------------------
# Fused forward kernel
# --------------------------------------------------------------------------
def make_sst_kernel(B, L, D, H, NL):
    S = L + 1
    hd = D // H
    scale = 1.0 / math.sqrt(hd)
    f32 = jnp.float32

    def _erf(z):
        # Abramowitz & Stegun 7.1.26 rational/exponential erf approximation,
        # max abs error ~1.5e-7 (fp32-noise level).  Uses only exp (EUP) + VPU
        # ops, so it is guaranteed to lower in Mosaic and overlaps the MXU work.
        p = 0.3275911
        a1, a2, a3, a4, a5 = (0.254829592, -0.284496736, 1.421413741,
                              -1.453152027, 1.061405429)
        az = jnp.abs(z)
        t = 1.0 / (1.0 + p * az)
        poly = ((((a5 * t + a4) * t + a3) * t + a2) * t + a1) * t
        y = 1.0 - poly * jnp.exp(-az * az)
        return jnp.where(z < 0.0, -y, y)

    def _gelu_exact(z):
        return 0.5 * z * (1.0 + _erf(z * (1.0 / math.sqrt(2.0))))

    def _layernorm(h, g, b, eps=1e-5):
        mu = jnp.mean(h, axis=-1, keepdims=True)
        var = jnp.mean(jnp.square(h - mu), axis=-1, keepdims=True)
        return (h - mu) * jax.lax.rsqrt(var + eps) * g + b

    def kernel(lat_ref, cls_ref, inpw_ref, inpb_ref, pe_ref,
               wqkv_ref, bqkv_ref, wo_ref, bo_ref,
               w1_ref, b1_ref, w2_ref, b2_ref,
               ln1g_ref, ln1b_ref, ln2g_ref, ln2b_ref,
               flng_ref, flnb_ref,
               seq_ref, slow_ref):
        # ---- input projection + CLS append + positional encoding ------------
        # lat_ref is the latent sequence padded with one zero row (the CLS slot).
        lat = lat_ref[0].astype(f32)                                   # (S, D)
        proj = jnp.dot(lat, inpw_ref[...].astype(f32),
                       preferred_element_type=f32) + inpb_ref[...].astype(f32)
        row = jax.lax.broadcasted_iota(jnp.int32, (S, D), 0)
        cls_b = jnp.broadcast_to(cls_ref[...].astype(f32), (S, D))
        x = jnp.where(row == S - 1, cls_b, proj) + pe_ref[...].astype(f32)

        # ---- encoder stack (statically unrolled; weights resident in VMEM) --
        for l in range(NL):
            # -- self-attention block: fused QKV, per-head softmax, fused out-proj
            qkv = jnp.dot(x, wqkv_ref[l].astype(f32),
                          preferred_element_type=f32) + bqkv_ref[l].astype(f32)
            wo = wo_ref[l].astype(f32)                                 # (D, D)
            sa = jnp.broadcast_to(bo_ref[l].astype(f32), (S, D))
            for h in range(H):
                q = qkv[:, h * hd:(h + 1) * hd]                        # (S, hd)
                k = qkv[:, D + h * hd:D + (h + 1) * hd]
                v = qkv[:, 2 * D + h * hd:2 * D + (h + 1) * hd]
                s = jnp.dot(q, k.T, preferred_element_type=f32) * scale
                s = s - jnp.max(s, axis=-1, keepdims=True)
                p_ = jnp.exp(s)
                # approx=True moves the divide fully onto the EUP when compute-bound.
                p_ = p_ * pl.reciprocal(jnp.sum(p_, axis=-1, keepdims=True),
                                        approx=False)
                o = jnp.dot(p_, v, preferred_element_type=f32)         # (S, hd)
                # fold this head's slice of the output projection into the loop
                sa = sa + jnp.dot(o, wo[h * hd:(h + 1) * hd, :],
                                  preferred_element_type=f32)
            x = _layernorm(x + sa,
                           ln1g_ref[l].astype(f32), ln1b_ref[l].astype(f32))

            # -- feed-forward block: linear1 + exact GELU + linear2, all on-chip
            hdn = jnp.dot(x, w1_ref[l].astype(f32),
                          preferred_element_type=f32) + b1_ref[l].astype(f32)
            hdn = _gelu_exact(hdn)                                     # (S, 4D)
            ffo = jnp.dot(hdn, w2_ref[l].astype(f32),
                          preferred_element_type=f32) + b2_ref[l].astype(f32)
            x = _layernorm(x + ffo,
                           ln2g_ref[l].astype(f32), ln2b_ref[l].astype(f32))

        # ---- outputs: written to HBM exactly once -----------------------------
        seq_ref[0] = x.astype(seq_ref.dtype)
        slow = _layernorm(x[S - 1:S, :],
                          flng_ref[...].astype(f32), flnb_ref[...].astype(f32))
        slow_ref[0] = slow.astype(slow_ref.dtype)

    return kernel


def _const_index_map(ndim):
    zeros = (0,) * ndim
    return lambda b: zeros


def sst_forward(params, latent_seq, n_heads):
    """Full SST forward in one fused pallas_call.  latent_seq: (B, L, D)."""
    B, L, D = latent_seq.shape
    S = L + 1
    H = n_heads
    NL = params["wqkv"].shape[0]
    dtype = latent_seq.dtype

    # Pad the latent sequence with one zero row per batch: the kernel overwrites
    # that row with the CLS token, so it can work on dense (S, D) slabs.
    lat_pad = jnp.concatenate(
        [latent_seq, jnp.zeros((B, 1, D), dtype)], axis=1)             # (B, S, D)
    pe = params["pe"][:S]

    inputs = (lat_pad, params["cls"], params["inp_w"], params["inp_b"], pe,
              params["wqkv"], params["bqkv"], params["wo"], params["bo"],
              params["w1"], params["b1"], params["w2"], params["b2"],
              params["ln1_g"], params["ln1_b"], params["ln2_g"], params["ln2_b"],
              params["fln_g"], params["fln_b"])

    in_specs = [pl.BlockSpec((1, S, D), lambda b: (b, 0, 0))]
    in_specs += [pl.BlockSpec(a.shape, _const_index_map(a.ndim))
                 for a in inputs[1:]]

    out_specs = (pl.BlockSpec((1, S, D), lambda b: (b, 0, 0)),
                 pl.BlockSpec((1, 1, D), lambda b: (b, 0, 0)))
    out_shape = (jax.ShapeDtypeStruct((B, S, D), dtype),
                 jax.ShapeDtypeStruct((B, 1, D), dtype))

    kernel = make_sst_kernel(B, L, D, H, NL)
    seq, slow = pl.pallas_call(
        kernel,
        grid=(B,),
        in_specs=in_specs,
        out_specs=out_specs,
        out_shape=out_shape,
        compiler_params=pltpu.CompilerParams(
            dimension_semantics=("parallel",)),   # megacore-shard batches on v7x
    )(*inputs)
    return {"sequence_output": seq, "slow_state": slow[:, 0, :]}


# --------------------------------------------------------------------------
# Parameters (stacked per-layer so the kernel indexes them with a static int)
# --------------------------------------------------------------------------
def sinusoidal_pe(max_len, d_model):
    position = jnp.arange(max_len, dtype=jnp.float32)[:, None]
    div_term = jnp.exp(jnp.arange(0, d_model, 2, dtype=jnp.float32)
                       * (-math.log(10000.0) / d_model))
    pe = jnp.zeros((max_len, d_model), dtype=jnp.float32)
    pe = pe.at[:, 0::2].set(jnp.sin(position * div_term))
    pe = pe.at[:, 1::2].set(jnp.cos(position * div_term))
    return pe


def init_params(key, embed_dim, n_layers, max_len):
    D = embed_dim
    ff = 4 * D

    def lin(k, fan_in, fan_out):
        k1, k2 = jax.random.split(k)
        w = jax.random.normal(k1, (fan_in, fan_out), jnp.float32) * 0.02
        b = jax.random.normal(k2, (fan_out,), jnp.float32) * 0.02
        return w, b

    keys = jax.random.split(key, 2 + n_layers)
    cls = jax.random.truncated_normal(keys[0], -2.0, 2.0, (1, D), jnp.float32) * 0.02
    inp_w, inp_b = lin(keys[1], D, D)

    wqkv, bqkv, wo, bo, w1, b1, w2, b2 = ([] for _ in range(8))
    for li in range(n_layers):
        lk = jax.random.split(keys[2 + li], 4)
        w, b = lin(lk[0], D, 3 * D); wqkv.append(w); bqkv.append(b[None, :])
        w, b = lin(lk[1], D, D);     wo.append(w);   bo.append(b[None, :])
        w, b = lin(lk[2], D, ff);    w1.append(w);   b1.append(b[None, :])
        w, b = lin(lk[3], ff, D);    w2.append(w);   b2.append(b[None, :])

    ones = jnp.ones((n_layers, 1, D), jnp.float32)
    zeros = jnp.zeros((n_layers, 1, D), jnp.float32)
    return dict(
        cls=cls,
        inp_w=inp_w, inp_b=inp_b[None, :],
        pe=sinusoidal_pe(max_len + 1, D),
        wqkv=jnp.stack(wqkv), bqkv=jnp.stack(bqkv),
        wo=jnp.stack(wo), bo=jnp.stack(bo),
        w1=jnp.stack(w1), b1=jnp.stack(b1),
        w2=jnp.stack(w2), b2=jnp.stack(b2),
        ln1_g=ones, ln1_b=zeros, ln2_g=ones, ln2_b=zeros,
        fln_g=jnp.ones((1, D), jnp.float32), fln_b=jnp.zeros((1, D), jnp.float32),
    )


# --------------------------------------------------------------------------
# Pure-JAX reference (for an in-script correctness check)
# --------------------------------------------------------------------------
def sst_reference(params, latent_seq, n_heads):
    B, L, D = latent_seq.shape
    H, hd, S = n_heads, D // n_heads, L + 1

    def ln(h, g, b, eps=1e-5):
        mu = h.mean(-1, keepdims=True)
        var = ((h - mu) ** 2).mean(-1, keepdims=True)
        return (h - mu) / jnp.sqrt(var + eps) * g + b

    x = latent_seq @ params["inp_w"] + params["inp_b"][0]
    cls = jnp.broadcast_to(params["cls"][None], (B, 1, D))
    x = jnp.concatenate([x, cls], axis=1) + params["pe"][:S][None]

    for l in range(params["wqkv"].shape[0]):
        qkv = x @ params["wqkv"][l] + params["bqkv"][l][0]
        q, k, v = jnp.split(qkv, 3, axis=-1)
        q = q.reshape(B, S, H, hd).transpose(0, 2, 1, 3)
        k = k.reshape(B, S, H, hd).transpose(0, 2, 1, 3)
        v = v.reshape(B, S, H, hd).transpose(0, 2, 1, 3)
        s = jnp.einsum("bhqd,bhkd->bhqk", q, k) / math.sqrt(hd)
        p = jax.nn.softmax(s, axis=-1)
        o = jnp.einsum("bhqk,bhkd->bhqd", p, v).transpose(0, 2, 1, 3).reshape(B, S, D)
        sa = o @ params["wo"][l] + params["bo"][l][0]
        x = ln(x + sa, params["ln1_g"][l][0], params["ln1_b"][l][0])
        hdn = jax.nn.gelu(x @ params["w1"][l] + params["b1"][l][0], approximate=False)
        ffo = hdn @ params["w2"][l] + params["b2"][l][0]
        x = ln(x + ffo, params["ln2_g"][l][0], params["ln2_b"][l][0])

    s_t = ln(x[:, -1], params["fln_g"][0], params["fln_b"][0])
    return {"sequence_output": x, "slow_state": s_t}


# --------------------------------------------------------------------------
if __name__ == "__main__":
    B, L, D = 2, 8, 32
    N_HEADS, N_LAYERS, MAX_LEN = 4, 2, 512

    key = jax.random.PRNGKey(0)
    kp, kx = jax.random.split(key)
    params = init_params(kp, D, N_LAYERS, MAX_LEN)
    latent_seq = jax.random.normal(kx, (B, L, D), jnp.float32)

    fwd = jax.jit(sst_forward, static_argnums=2)
    result = fwd(params, latent_seq, N_HEADS)
    jax.block_until_ready(result["sequence_output"])
    jax.block_until_ready(result["slow_state"])

    assert result["sequence_output"].shape == (B, L + 1, D)
    assert result["slow_state"].shape == (B, D)
    assert bool(jnp.all(jnp.isfinite(result["sequence_output"])))
    assert bool(jnp.all(jnp.isfinite(result["slow_state"])))

    ref = sst_reference(params, latent_seq, N_HEADS)
    assert bool(jnp.allclose(result["sequence_output"], ref["sequence_output"],
                             atol=2e-3, rtol=2e-3))
    assert bool(jnp.allclose(result["slow_state"], ref["slow_state"],
                             atol=2e-3, rtol=2e-3))
    print("KERNEL_OK")
</pallas_src>

<mosaic_0001>
module attributes {stable_mosaic.version = 11 : i64} {
  func.func @kernel(%arg0: i32, %arg1: memref<1x9x32xf32, #tpu.memory_space<vmem>>, %arg2: memref<1x32xf32, #tpu.memory_space<vmem>>, %arg3: memref<32x32xf32, #tpu.memory_space<vmem>>, %arg4: memref<1x32xf32, #tpu.memory_space<vmem>>, %arg5: memref<9x32xf32, #tpu.memory_space<vmem>>, %arg6: memref<2x32x96xf32, #tpu.memory_space<vmem>>, %arg7: memref<2x1x96xf32, #tpu.memory_space<vmem>>, %arg8: memref<2x32x32xf32, #tpu.memory_space<vmem>>, %arg9: memref<2x1x32xf32, #tpu.memory_space<vmem>>, %arg10: memref<2x32x128xf32, #tpu.memory_space<vmem>>, %arg11: memref<2x1x128xf32, #tpu.memory_space<vmem>>, %arg12: memref<2x128x32xf32, #tpu.memory_space<vmem>>, %arg13: memref<2x1x32xf32, #tpu.memory_space<vmem>>, %arg14: memref<2x1x32xf32, #tpu.memory_space<vmem>>, %arg15: memref<2x1x32xf32, #tpu.memory_space<vmem>>, %arg16: memref<2x1x32xf32, #tpu.memory_space<vmem>>, %arg17: memref<2x1x32xf32, #tpu.memory_space<vmem>>, %arg18: memref<1x32xf32, #tpu.memory_space<vmem>>, %arg19: memref<1x32xf32, #tpu.memory_space<vmem>>, %arg20: memref<1x9x32xf32, #tpu.memory_space<vmem>>, %arg21: memref<1x1x32xf32, #tpu.memory_space<vmem>>) attributes {dimension_semantics = [#tpu.dimension_semantics<parallel>], iteration_bounds = array<i64: 2>, scalar_prefetch = 0 : i64, scratch_operands = 0 : i64, tpu.core_type = #tpu.core_type<tc>, window_params = [{transform_indices = @transform_0, window_bounds = array<i64: 1, 9, 32>}, {pipeline_mode = #tpu.pipeline_mode<synchronous>, transform_indices = @transform_1, window_bounds = array<i64: 1, 32>}, {pipeline_mode = #tpu.pipeline_mode<synchronous>, transform_indices = @transform_2, window_bounds = array<i64: 32, 32>}, {pipeline_mode = #tpu.pipeline_mode<synchronous>, transform_indices = @transform_3, window_bounds = array<i64: 1, 32>}, {pipeline_mode = #tpu.pipeline_mode<synchronous>, transform_indices = @transform_4, window_bounds = array<i64: 9, 32>}, {pipeline_mode = #tpu.pipeline_mode<synchronous>, transform_indices = @transform_5, window_bounds = array<i64: 2, 32, 96>}, {pipeline_mode = #tpu.pipeline_mode<synchronous>, transform_indices = @transform_6, window_bounds = array<i64: 2, 1, 96>}, {pipeline_mode = #tpu.pipeline_mode<synchronous>, transform_indices = @transform_7, window_bounds = array<i64: 2, 32, 32>}, {pipeline_mode = #tpu.pipeline_mode<synchronous>, transform_indices = @transform_8, window_bounds = array<i64: 2, 1, 32>}, {pipeline_mode = #tpu.pipeline_mode<synchronous>, transform_indices = @transform_9, window_bounds = array<i64: 2, 32, 128>}, {pipeline_mode = #tpu.pipeline_mode<synchronous>, transform_indices = @transform_10, window_bounds = array<i64: 2, 1, 128>}, {pipeline_mode = #tpu.pipeline_mode<synchronous>, transform_indices = @transform_11, window_bounds = array<i64: 2, 128, 32>}, {pipeline_mode = #tpu.pipeline_mode<synchronous>, transform_indices = @transform_12, window_bounds = array<i64: 2, 1, 32>}, {pipeline_mode = #tpu.pipeline_mode<synchronous>, transform_indices = @transform_13, window_bounds = array<i64: 2, 1, 32>}, {pipeline_mode = #tpu.pipeline_mode<synchronous>, transform_indices = @transform_14, window_bounds = array<i64: 2, 1, 32>}, {pipeline_mode = #tpu.pipeline_mode<synchronous>, transform_indices = @transform_15, window_bounds = array<i64: 2, 1, 32>}, {pipeline_mode = #tpu.pipeline_mode<synchronous>, transform_indices = @transform_16, window_bounds = array<i64: 2, 1, 32>}, {pipeline_mode = #tpu.pipeline_mode<synchronous>, transform_indices = @transform_17, window_bounds = array<i64: 1, 32>}, {pipeline_mode = #tpu.pipeline_mode<synchronous>, transform_indices = @transform_18, window_bounds = array<i64: 1, 32>}, {transform_indices = @transform_19, window_bounds = array<i64: 1, 9, 32>}, {transform_indices = @transform_20, window_bounds = array<i64: 1, 1, 32>}]} {
    %c0 = arith.constant 0 : index
    %c0_0 = arith.constant 0 : index
    %c0_1 = arith.constant 0 : index
    %0 = vector.load %arg1[%c0, %c0_0, %c0_1] : memref<1x9x32xf32, #tpu.memory_space<vmem>>, vector<1x9x32xf32>
    %1 = vector.shape_cast %0 : vector<1x9x32xf32> to vector<9x32xf32>
    %c0_2 = arith.constant 0 : index
    %c0_3 = arith.constant 0 : index
    %2 = vector.load %arg3[%c0_2, %c0_3] : memref<32x32xf32, #tpu.memory_space<vmem>>, vector<32x32xf32>
    %cst = arith.constant dense<0.000000e+00> : vector<9x32xf32>
    %3 = tpu.matmul %1, %2, %cst {dimension_numbers = #tpu.dot_dimension_numbers<[1], [0], [0], [1], [0, 0, 1, 1], [], []>} : vector<9x32xf32>, vector<32x32xf32>, vector<9x32xf32> -> vector<9x32xf32>
    %c0_4 = arith.constant 0 : index
    %c0_5 = arith.constant 0 : index
    %4 = vector.load %arg4[%c0_4, %c0_5] : memref<1x32xf32, #tpu.memory_space<vmem>>, vector<1x32xf32>
    %5 = vector.broadcast %4 : vector<1x32xf32> to vector<9x32xf32>
    %6 = arith.addf %3, %5 : vector<9x32xf32>
    %7 = tpu.iota {dimensions = array<i32: 0>} : vector<9x32xi32>
    %c0_6 = arith.constant 0 : index
    %c0_7 = arith.constant 0 : index
    %8 = vector.load %arg2[%c0_6, %c0_7] : memref<1x32xf32, #tpu.memory_space<vmem>>, vector<1x32xf32>
    %9 = vector.shape_cast %8 : vector<1x32xf32> to vector<1x32xf32>
    %10 = vector.broadcast %9 : vector<1x32xf32> to vector<9x32xf32>
    %c8_i32 = arith.constant 8 : i32
    %11 = vector.broadcast %c8_i32 : i32 to vector<9x32xi32>
    %12 = arith.cmpi eq, %7, %11 : vector<9x32xi32>
    %13 = arith.select %12, %10, %6 : vector<9x32xi1>, vector<9x32xf32>
    %c0_8 = arith.constant 0 : index
    %c0_9 = arith.constant 0 : index
    %14 = vector.load %arg5[%c0_8, %c0_9] : memref<9x32xf32, #tpu.memory_space<vmem>>, vector<9x32xf32>
    %15 = arith.addf %13, %14 : vector<9x32xf32>
    %c0_10 = arith.constant 0 : index
    %c0_11 = arith.constant 0 : index
    %c0_12 = arith.constant 0 : index
    %16 = vector.load %arg6[%c0_10, %c0_11, %c0_12] : memref<2x32x96xf32, #tpu.memory_space<vmem>>, vector<1x32x96xf32>
    %17 = vector.shape_cast %16 : vector<1x32x96xf32> to vector<32x96xf32>
    %cst_13 = arith.constant dense<0.000000e+00> : vector<9x96xf32>
    %18 = tpu.matmul %15, %17, %cst_13 {dimension_numbers = #tpu.dot_dimension_numbers<[1], [0], [0], [1], [0, 0, 1, 1], [], []>} : vector<9x32xf32>, vector<32x96xf32>, vector<9x96xf32> -> vector<9x96xf32>
    %c0_14 = arith.constant 0 : index
    %c0_15 = arith.constant 0 : index
    %c0_16 = arith.constant 0 : index
    %19 = vector.load %arg7[%c0_14, %c0_15, %c0_16] : memref<2x1x96xf32, #tpu.memory_space<vmem>>, vector<1x1x96xf32>
    %20 = vector.shape_cast %19 : vector<1x1x96xf32> to vector<1x96xf32>
    %21 = vector.broadcast %20 : vector<1x96xf32> to vector<9x96xf32>
    %22 = arith.addf %18, %21 : vector<9x96xf32>
    %c0_17 = arith.constant 0 : index
    %c0_18 = arith.constant 0 : index
    %c0_19 = arith.constant 0 : index
    %23 = vector.load %arg8[%c0_17, %c0_18, %c0_19] : memref<2x32x32xf32, #tpu.memory_space<vmem>>, vector<1x32x32xf32>
    %24 = vector.shape_cast %23 : vector<1x32x32xf32> to vector<32x32xf32>
    %c0_20 = arith.constant 0 : index
    %c0_21 = arith.constant 0 : index
    %c0_22 = arith.constant 0 : index
    %25 = vector.load %arg9[%c0_20, %c0_21, %c0_22] : memref<2x1x32xf32, #tpu.memory_space<vmem>>, vector<1x1x32xf32>
    %26 = vector.shape_cast %25 : vector<1x1x32xf32> to vector<1x32xf32>
    %27 = vector.shape_cast %26 : vector<1x32xf32> to vector<1x32xf32>
    %28 = vector.broadcast %27 : vector<1x32xf32> to vector<9x32xf32>
    %29 = vector.extract_strided_slice %22 {offsets = [0, 0], sizes = [9, 8], strides = [1, 1]} : vector<9x96xf32> to vector<9x8xf32>
    %30 = vector.extract_strided_slice %22 {offsets = [0, 32], sizes = [9, 8], strides = [1, 1]} : vector<9x96xf32> to vector<9x8xf32>
    %31 = vector.extract_strided_slice %22 {offsets = [0, 64], sizes = [9, 8], strides = [1, 1]} : vector<9x96xf32> to vector<9x8xf32>
    %32 = tpu.transpose %30, [1, 0] : vector<9x8xf32> -> vector<8x9xf32>
    %cst_23 = arith.constant dense<0.000000e+00> : vector<9x9xf32>
    %33 = tpu.matmul %29, %32, %cst_23 {dimension_numbers = #tpu.dot_dimension_numbers<[1], [0], [0], [1], [0, 0, 1, 1], [], []>} : vector<9x8xf32>, vector<8x9xf32>, vector<9x9xf32> -> vector<9x9xf32>
    %cst_24 = arith.constant 0.353553385 : f32
    %34 = vector.broadcast %cst_24 : f32 to vector<9x9xf32>
    %35 = arith.mulf %33, %34 : vector<9x9xf32>
    %cst_25 = arith.constant dense<0xFF800000> : vector<9xf32>
    %36 = vector.multi_reduction <maximumf>, %35, %cst_25 [1] : vector<9x9xf32> to vector<9xf32>
    %37 = vector.shape_cast %36 : vector<9xf32> to vector<9x1xf32>
    %38 = vector.broadcast %37 : vector<9x1xf32> to vector<9x9xf32>
    %39 = arith.subf %35, %38 : vector<9x9xf32>
    %40 = math.exp %39 : vector<9x9xf32>
    %cst_26 = arith.constant dense<0.000000e+00> : vector<9xf32>
    %41 = vector.multi_reduction <add>, %40, %cst_26 [1] : vector<9x9xf32> to vector<9xf32>
    %42 = vector.shape_cast %41 : vector<9xf32> to vector<9x1xf32>
    %43 = tpu.reciprocal %42 : vector<9x1xf32> -> vector<9x1xf32>
    %44 = vector.broadcast %43 : vector<9x1xf32> to vector<9x9xf32>
    %45 = arith.mulf %40, %44 : vector<9x9xf32>
    %cst_27 = arith.constant dense<0.000000e+00> : vector<9x8xf32>
    %46 = tpu.matmul %45, %31, %cst_27 {dimension_numbers = #tpu.dot_dimension_numbers<[1], [0], [0], [1], [0, 0, 1, 1], [], []>} : vector<9x9xf32>, vector<9x8xf32>, vector<9x8xf32> -> vector<9x8xf32>
    %47 = vector.extract_strided_slice %24 {offsets = [0, 0], sizes = [8, 32], strides = [1, 1]} : vector<32x32xf32> to vector<8x32xf32>
    %cst_28 = arith.constant dense<0.000000e+00> : vector<9x32xf32>
    %48 = tpu.matmul %46, %47, %cst_28 {dimension_numbers = #tpu.dot_dimension_numbers<[1], [0], [0], [1], [0, 0, 1, 1], [], []>} : vector<9x8xf32>, vector<8x32xf32>, vector<9x32xf32> -> vector<9x32xf32>
    %49 = arith.addf %28, %48 : vector<9x32xf32>
    %50 = vector.extract_strided_slice %22 {offsets = [0, 8], sizes = [9, 8], strides = [1, 1]} : vector<9x96xf32> to vector<9x8xf32>
    %51 = vector.extract_strided_slice %22 {offsets = [0, 40], sizes = [9, 8], strides = [1, 1]} : vector<9x96xf32> to vector<9x8xf32>
    %52 = vector.extract_strided_slice %22 {offsets = [0, 72], sizes = [9, 8], strides = [1, 1]} : vector<9x96xf32> to vector<9x8xf32>
    %53 = tpu.transpose %51, [1, 0] : vector<9x8xf32> -> vector<8x9xf32>
    %cst_29 = arith.constant dense<0.000000e+00> : vector<9x9xf32>
    %54 = tpu.matmul %50, %53, %cst_29 {dimension_numbers = #tpu.dot_dimension_numbers<[1], [0], [0], [1], [0, 0, 1, 1], [], []>} : vector<9x8xf32>, vector<8x9xf32>, vector<9x9xf32> -> vector<9x9xf32>
    %cst_30 = arith.constant 0.353553385 : f32
    %55 = vector.broadcast %cst_30 : f32 to vector<9x9xf32>
    %56 = arith.mulf %54, %55 : vector<9x9xf32>
    %cst_31 = arith.constant dense<0xFF800000> : vector<9xf32>
    %57 = vector.multi_reduction <maximumf>, %56, %cst_31 [1] : vector<9x9xf32> to vector<9xf32>
    %58 = vector.shape_cast %57 : vector<9xf32> to vector<9x1xf32>
    %59 = vector.broadcast %58 : vector<9x1xf32> to vector<9x9xf32>
    %60 = arith.subf %56, %59 : vector<9x9xf32>
    %61 = math.exp %60 : vector<9x9xf32>
    %cst_32 = arith.constant dense<0.000000e+00> : vector<9xf32>
    %62 = vector.multi_reduction <add>, %61, %cst_32 [1] : vector<9x9xf32> to vector<9xf32>
    %63 = vector.shape_cast %62 : vector<9xf32> to vector<9x1xf32>
    %64 = tpu.reciprocal %63 : vector<9x1xf32> -> vector<9x1xf32>
    %65 = vector.broadcast %64 : vector<9x1xf32> to vector<9x9xf32>
    %66 = arith.mulf %61, %65 : vector<9x9xf32>
    %cst_33 = arith.constant dense<0.000000e+00> : vector<9x8xf32>
    %67 = tpu.matmul %66, %52, %cst_33 {dimension_numbers = #tpu.dot_dimension_numbers<[1], [0], [0], [1], [0, 0, 1, 1], [], []>} : vector<9x9xf32>, vector<9x8xf32>, vector<9x8xf32> -> vector<9x8xf32>
    %68 = vector.extract_strided_slice %24 {offsets = [8, 0], sizes = [8, 32], strides = [1, 1]} : vector<32x32xf32> to vector<8x32xf32>
    %cst_34 = arith.constant dense<0.000000e+00> : vector<9x32xf32>
    %69 = tpu.matmul %67, %68, %cst_34 {dimension_numbers = #tpu.dot_dimension_numbers<[1], [0], [0], [1], [0, 0, 1, 1], [], []>} : vector<9x8xf32>, vector<8x32xf32>, vector<9x32xf32> -> vector<9x32xf32>
    %70 = arith.addf %49, %69 : vector<9x32xf32>
    %71 = vector.extract_strided_slice %22 {offsets = [0, 16], sizes = [9, 8], strides = [1, 1]} : vector<9x96xf32> to vector<9x8xf32>
    %72 = vector.extract_strided_slice %22 {offsets = [0, 48], sizes = [9, 8], strides = [1, 1]} : vector<9x96xf32> to vector<9x8xf32>
    %73 = vector.extract_strided_slice %22 {offsets = [0, 80], sizes = [9, 8], strides = [1, 1]} : vector<9x96xf32> to vector<9x8xf32>
    %74 = tpu.transpose %72, [1, 0] : vector<9x8xf32> -> vector<8x9xf32>
    %cst_35 = arith.constant dense<0.000000e+00> : vector<9x9xf32>
    %75 = tpu.matmul %71, %74, %cst_35 {dimension_numbers = #tpu.dot_dimension_numbers<[1], [0], [0], [1], [0, 0, 1, 1], [], []>} : vector<9x8xf32>, vector<8x9xf32>, vector<9x9xf32> -> vector<9x9xf32>
    %cst_36 = arith.constant 0.353553385 : f32
    %76 = vector.broadcast %cst_36 : f32 to vector<9x9xf32>
    %77 = arith.mulf %75, %76 : vector<9x9xf32>
    %cst_37 = arith.constant dense<0xFF800000> : vector<9xf32>
    %78 = vector.multi_reduction <maximumf>, %77, %cst_37 [1] : vector<9x9xf32> to vector<9xf32>
    %79 = vector.shape_cast %78 : vector<9xf32> to vector<9x1xf32>
    %80 = vector.broadcast %79 : vector<9x1xf32> to vector<9x9xf32>
    %81 = arith.subf %77, %80 : vector<9x9xf32>
    %82 = math.exp %81 : vector<9x9xf32>
    %cst_38 = arith.constant dense<0.000000e+00> : vector<9xf32>
    %83 = vector.multi_reduction <add>, %82, %cst_38 [1] : vector<9x9xf32> to vector<9xf32>
    %84 = vector.shape_cast %83 : vector<9xf32> to vector<9x1xf32>
    %85 = tpu.reciprocal %84 : vector<9x1xf32> -> vector<9x1xf32>
    %86 = vector.broadcast %85 : vector<9x1xf32> to vector<9x9xf32>
    %87 = arith.mulf %82, %86 : vector<9x9xf32>
    %cst_39 = arith.constant dense<0.000000e+00> : vector<9x8xf32>
    %88 = tpu.matmul %87, %73, %cst_39 {dimension_numbers = #tpu.dot_dimension_numbers<[1], [0], [0], [1], [0, 0, 1, 1], [], []>} : vector<9x9xf32>, vector<9x8xf32>, vector<9x8xf32> -> vector<9x8xf32>
    %89 = vector.extract_strided_slice %24 {offsets = [16, 0], sizes = [8, 32], strides = [1, 1]} : vector<32x32xf32> to vector<8x32xf32>
    %cst_40 = arith.constant dense<0.000000e+00> : vector<9x32xf32>
    %90 = tpu.matmul %88, %89, %cst_40 {dimension_numbers = #tpu.dot_dimension_numbers<[1], [0], [0], [1], [0, 0, 1, 1], [], []>} : vector<9x8xf32>, vector<8x32xf32>, vector<9x32xf32> -> vector<9x32xf32>
    %91 = arith.addf %70, %90 : vector<9x32xf32>
    %92 = vector.extract_strided_slice %22 {offsets = [0, 24], sizes = [9, 8], strides = [1, 1]} : vector<9x96xf32> to vector<9x8xf32>
    %93 = vector.extract_strided_slice %22 {offsets = [0, 56], sizes = [9, 8], strides = [1, 1]} : vector<9x96xf32> to vector<9x8xf32>
    %94 = vector.extract_strided_slice %22 {offsets = [0, 88], sizes = [9, 8], strides = [1, 1]} : vector<9x96xf32> to vector<9x8xf32>
    %95 = tpu.transpose %93, [1, 0] : vector<9x8xf32> -> vector<8x9xf32>
    %cst_41 = arith.constant dense<0.000000e+00> : vector<9x9xf32>
    %96 = tpu.matmul %92, %95, %cst_41 {dimension_numbers = #tpu.dot_dimension_numbers<[1], [0], [0], [1], [0, 0, 1, 1], [], []>} : vector<9x8xf32>, vector<8x9xf32>, vector<9x9xf32> -> vector<9x9xf32>
    %cst_42 = arith.constant 0.353553385 : f32
    %97 = vector.broadcast %cst_42 : f32 to vector<9x9xf32>
    %98 = arith.mulf %96, %97 : vector<9x9xf32>
    %cst_43 = arith.constant dense<0xFF800000> : vector<9xf32>
    %99 = vector.multi_reduction <maximumf>, %98, %cst_43 [1] : vector<9x9xf32> to vector<9xf32>
    %100 = vector.shape_cast %99 : vector<9xf32> to vector<9x1xf32>
    %101 = vector.broadcast %100 : vector<9x1xf32> to vector<9x9xf32>
    %102 = arith.subf %98, %101 : vector<9x9xf32>
    %103 = math.exp %102 : vector<9x9xf32>
    %cst_44 = arith.constant dense<0.000000e+00> : vector<9xf32>
    %104 = vector.multi_reduction <add>, %103, %cst_44 [1] : vector<9x9xf32> to vector<9xf32>
    %105 = vector.shape_cast %104 : vector<9xf32> to vector<9x1xf32>
    %106 = tpu.reciprocal %105 : vector<9x1xf32> -> vector<9x1xf32>
    %107 = vector.broadcast %106 : vector<9x1xf32> to vector<9x9xf32>
    %108 = arith.mulf %103, %107 : vector<9x9xf32>
    %cst_45 = arith.constant dense<0.000000e+00> : vector<9x8xf32>
    %109 = tpu.matmul %108, %94, %cst_45 {dimension_numbers = #tpu.dot_dimension_numbers<[1], [0], [0], [1], [0, 0, 1, 1], [], []>} : vector<9x9xf32>, vector<9x8xf32>, vector<9x8xf32> -> vector<9x8xf32>
    %110 = vector.extract_strided_slice %24 {offsets = [24, 0], sizes = [8, 32], strides = [1, 1]} : vector<32x32xf32> to vector<8x32xf32>
    %cst_46 = arith.constant dense<0.000000e+00> : vector<9x32xf32>
    %111 = tpu.matmul %109, %110, %cst_46 {dimension_numbers = #tpu.dot_dimension_numbers<[1], [0], [0], [1], [0, 0, 1, 1], [], []>} : vector<9x8xf32>, vector<8x32xf32>, vector<9x32xf32> -> vector<9x32xf32>
    %112 = arith.addf %91, %111 : vector<9x32xf32>
    %113 = arith.addf %15, %112 : vector<9x32xf32>
    %c0_47 = arith.constant 0 : index
    %c0_48 = arith.constant 0 : index
    %c0_49 = arith.constant 0 : index
    %114 = vector.load %arg14[%c0_47, %c0_48, %c0_49] : memref<2x1x32xf32, #tpu.memory_space<vmem>>, vector<1x1x32xf32>
    %115 = vector.shape_cast %114 : vector<1x1x32xf32> to vector<1x32xf32>
    %c0_50 = arith.constant 0 : index
    %c0_51 = arith.constant 0 : index
    %c0_52 = arith.constant 0 : index
    %116 = vector.load %arg15[%c0_50, %c0_51, %c0_52] : memref<2x1x32xf32, #tpu.memory_space<vmem>>, vector<1x1x32xf32>
    %117 = vector.shape_cast %116 : vector<1x1x32xf32> to vector<1x32xf32>
    %cst_53 = arith.constant dense<0.000000e+00> : vector<9xf32>
    %118 = vector.multi_reduction <add>, %113, %cst_53 [1] : vector<9x32xf32> to vector<9xf32>
    %119 = vector.shape_cast %118 : vector<9xf32> to vector<9x1xf32>
    %cst_54 = arith.constant 3.200000e+01 : f32
    %120 = vector.broadcast %cst_54 : f32 to vector<9x1xf32>
    %121 = arith.divf %119, %120 : vector<9x1xf32>
    %122 = vector.broadcast %121 : vector<9x1xf32> to vector<9x32xf32>
    %123 = arith.subf %113, %122 : vector<9x32xf32>
    %124 = arith.mulf %123, %123 : vector<9x32xf32>
    %cst_55 = arith.constant dense<0.000000e+00> : vector<9xf32>
    %125 = vector.multi_reduction <add>, %124, %cst_55 [1] : vector<9x32xf32> to vector<9xf32>
    %126 = vector.shape_cast %125 : vector<9xf32> to vector<9x1xf32>
    %cst_56 = arith.constant 3.200000e+01 : f32
    %127 = vector.broadcast %cst_56 : f32 to vector<9x1xf32>
    %128 = arith.divf %126, %127 : vector<9x1xf32>
    %129 = vector.broadcast %121 : vector<9x1xf32> to vector<9x32xf32>
    %130 = arith.subf %113, %129 : vector<9x32xf32>
    %cst_57 = arith.constant 9.99999974E-6 : f32
    %131 = vector.broadcast %cst_57 : f32 to vector<9x1xf32>
    %132 = arith.addf %128, %131 : vector<9x1xf32>
    %133 = math.rsqrt %132 : vector<9x1xf32>
    %134 = vector.broadcast %133 : vector<9x1xf32> to vector<9x32xf32>
    %135 = arith.mulf %130, %134 : vector<9x32xf32>
    %136 = vector.broadcast %115 : vector<1x32xf32> to vector<9x32xf32>
    %137 = arith.mulf %135, %136 : vector<9x32xf32>
    %138 = vector.broadcast %117 : vector<1x32xf32> to vector<9x32xf32>
    %139 = arith.addf %137, %138 : vector<9x32xf32>
    %c0_58 = arith.constant 0 : index
    %c0_59 = arith.constant 0 : index
    %c0_60 = arith.constant 0 : index
    %140 = vector.load %arg10[%c0_58, %c0_59, %c0_60] : memref<2x32x128xf32, #tpu.memory_space<vmem>>, vector<1x32x128xf32>
    %141 = vector.shape_cast %140 : vector<1x32x128xf32> to vector<32x128xf32>
    %cst_61 = arith.constant dense<0.000000e+00> : vector<9x128xf32>
    %142 = tpu.matmul %139, %141, %cst_61 {dimension_numbers = #tpu.dot_dimension_numbers<[1], [0], [0], [1], [0, 0, 1, 1], [], []>} : vector<9x32xf32>, vector<32x128xf32>, vector<9x128xf32> -> vector<9x128xf32>
    %c0_62 = arith.constant 0 : index
    %c0_63 = arith.constant 0 : index
    %c0_64 = arith.constant 0 : index
    %143 = vector.load %arg11[%c0_62, %c0_63, %c0_64] : memref<2x1x128xf32, #tpu.memory_space<vmem>>, vector<1x1x128xf32>
    %144 = vector.shape_cast %143 : vector<1x1x128xf32> to vector<1x128xf32>
    %145 = vector.broadcast %144 : vector<1x128xf32> to vector<9x128xf32>
    %146 = arith.addf %142, %145 : vector<9x128xf32>
    %cst_65 = arith.constant 5.000000e-01 : f32
    %147 = vector.broadcast %cst_65 : f32 to vector<9x128xf32>
    %148 = arith.mulf %147, %146 : vector<9x128xf32>
    %cst_66 = arith.constant 0.707106769 : f32
    %149 = vector.broadcast %cst_66 : f32 to vector<9x128xf32>
    %150 = arith.mulf %146, %149 : vector<9x128xf32>
    %151 = math.absf %150 : vector<9x128xf32>
    %cst_67 = arith.constant 0.327591091 : f32
    %152 = vector.broadcast %cst_67 : f32 to vector<9x128xf32>
    %153 = arith.mulf %152, %151 : vector<9x128xf32>
    %cst_68 = arith.constant 1.000000e+00 : f32
    %154 = vector.broadcast %cst_68 : f32 to vector<9x128xf32>
    %155 = arith.addf %154, %153 : vector<9x128xf32>
    %cst_69 = arith.constant 1.000000e+00 : f32
    %156 = vector.broadcast %cst_69 : f32 to vector<9x128xf32>
    %157 = arith.divf %156, %155 : vector<9x128xf32>
    %cst_70 = arith.constant 1.06140542 : f32
    %158 = vector.broadcast %cst_70 : f32 to vector<9x128xf32>
    %159 = arith.mulf %158, %157 : vector<9x128xf32>
    %cst_71 = arith.constant -1.45315206 : f32
    %160 = vector.broadcast %cst_71 : f32 to vector<9x128xf32>
    %161 = arith.addf %159, %160 : vector<9x128xf32>
    %162 = arith.mulf %161, %157 : vector<9x128xf32>
    %cst_72 = arith.constant 1.42141378 : f32
    %163 = vector.broadcast %cst_72 : f32 to vector<9x128xf32>
    %164 = arith.addf %162, %163 : vector<9x128xf32>
    %165 = arith.mulf %164, %157 : vector<9x128xf32>
    %cst_73 = arith.constant -0.284496725 : f32
    %166 = vector.broadcast %cst_73 : f32 to vector<9x128xf32>
    %167 = arith.addf %165, %166 : vector<9x128xf32>
    %168 = arith.mulf %167, %157 : vector<9x128xf32>
    %cst_74 = arith.constant 0.254829586 : f32
    %169 = vector.broadcast %cst_74 : f32 to vector<9x128xf32>
    %170 = arith.addf %168, %169 : vector<9x128xf32>
    %171 = arith.mulf %170, %157 : vector<9x128xf32>
    %cst_75 = arith.constant 0.000000e+00 : f32
    %172 = vector.broadcast %cst_75 : f32 to vector<9x128xf32>
    %173 = arith.subf %172, %151 : vector<9x128xf32>
    %174 = arith.mulf %173, %151 : vector<9x128xf32>
    %175 = math.exp %174 : vector<9x128xf32>
    %176 = arith.mulf %171, %175 : vector<9x128xf32>
    %cst_76 = arith.constant 1.000000e+00 : f32
    %177 = vector.broadcast %cst_76 : f32 to vector<9x128xf32>
    %178 = arith.subf %177, %176 : vector<9x128xf32>
    %cst_77 = arith.constant 0.000000e+00 : f32
    %179 = vector.broadcast %cst_77 : f32 to vector<9x128xf32>
    %180 = arith.cmpf olt, %150, %179 : vector<9x128xf32>
    %cst_78 = arith.constant 0.000000e+00 : f32
    %181 = vector.broadcast %cst_78 : f32 to vector<9x128xf32>
    %182 = arith.subf %181, %178 : vector<9x128xf32>
    %183 = arith.select %180, %182, %178 : vector<9x128xi1>, vector<9x128xf32>
    %cst_79 = arith.constant 1.000000e+00 : f32
    %184 = vector.broadcast %cst_79 : f32 to vector<9x128xf32>
    %185 = arith.addf %184, %183 : vector<9x128xf32>
    %186 = arith.mulf %148, %185 : vector<9x128xf32>
    %c0_80 = arith.constant 0 : index
    %c0_81 = arith.constant 0 : index
    %c0_82 = arith.constant 0 : index
    %187 = vector.load %arg12[%c0_80, %c0_81, %c0_82] : memref<2x128x32xf32, #tpu.memory_space<vmem>>, vector<1x128x32xf32>
    %188 = vector.shape_cast %187 : vector<1x128x32xf32> to vector<128x32xf32>
    %cst_83 = arith.constant dense<0.000000e+00> : vector<9x32xf32>
    %189 = tpu.matmul %186, %188, %cst_83 {dimension_numbers = #tpu.dot_dimension_numbers<[1], [0], [0], [1], [0, 0, 1, 1], [], []>} : vector<9x128xf32>, vector<128x32xf32>, vector<9x32xf32> -> vector<9x32xf32>
    %c0_84 = arith.constant 0 : index
    %c0_85 = arith.constant 0 : index
    %c0_86 = arith.constant 0 : index
    %190 = vector.load %arg13[%c0_84, %c0_85, %c0_86] : memref<2x1x32xf32, #tpu.memory_space<vmem>>, vector<1x1x32xf32>
    %191 = vector.shape_cast %190 : vector<1x1x32xf32> to vector<1x32xf32>
    %192 = vector.broadcast %191 : vector<1x32xf32> to vector<9x32xf32>
    %193 = arith.addf %189, %192 : vector<9x32xf32>
    %194 = arith.addf %139, %193 : vector<9x32xf32>
    %c0_87 = arith.constant 0 : index
    %c0_88 = arith.constant 0 : index
    %c0_89 = arith.constant 0 : index
    %195 = vector.load %arg16[%c0_87, %c0_88, %c0_89] : memref<2x1x32xf32, #tpu.memory_space<vmem>>, vector<1x1x32xf32>
    %196 = vector.shape_cast %195 : vector<1x1x32xf32> to vector<1x32xf32>
    %c0_90 = arith.constant 0 : index
    %c0_91 = arith.constant 0 : index
    %c0_92 = arith.constant 0 : index
    %197 = vector.load %arg17[%c0_90, %c0_91, %c0_92] : memref<2x1x32xf32, #tpu.memory_space<vmem>>, vector<1x1x32xf32>
    %198 = vector.shape_cast %197 : vector<1x1x32xf32> to vector<1x32xf32>
    %cst_93 = arith.constant dense<0.000000e+00> : vector<9xf32>
    %199 = vector.multi_reduction <add>, %194, %cst_93 [1] : vector<9x32xf32> to vector<9xf32>
    %200 = vector.shape_cast %199 : vector<9xf32> to vector<9x1xf32>
    %cst_94 = arith.constant 3.200000e+01 : f32
    %201 = vector.broadcast %cst_94 : f32 to vector<9x1xf32>
    %202 = arith.divf %200, %201 : vector<9x1xf32>
    %203 = vector.broadcast %202 : vector<9x1xf32> to vector<9x32xf32>
    %204 = arith.subf %194, %203 : vector<9x32xf32>
    %205 = arith.mulf %204, %204 : vector<9x32xf32>
    %cst_95 = arith.constant dense<0.000000e+00> : vector<9xf32>
    %206 = vector.multi_reduction <add>, %205, %cst_95 [1] : vector<9x32xf32> to vector<9xf32>
    %207 = vector.shape_cast %206 : vector<9xf32> to vector<9x1xf32>
    %cst_96 = arith.constant 3.200000e+01 : f32
    %208 = vector.broadcast %cst_96 : f32 to vector<9x1xf32>
    %209 = arith.divf %207, %208 : vector<9x1xf32>
    %210 = vector.broadcast %202 : vector<9x1xf32> to vector<9x32xf32>
    %211 = arith.subf %194, %210 : vector<9x32xf32>
    %cst_97 = arith.constant 9.99999974E-6 : f32
    %212 = vector.broadcast %cst_97 : f32 to vector<9x1xf32>
    %213 = arith.addf %209, %212 : vector<9x1xf32>
    %214 = math.rsqrt %213 : vector<9x1xf32>
    %215 = vector.broadcast %214 : vector<9x1xf32> to vector<9x32xf32>
    %216 = arith.mulf %211, %215 : vector<9x32xf32>
    %217 = vector.broadcast %196 : vector<1x32xf32> to vector<9x32xf32>
    %218 = arith.mulf %216, %217 : vector<9x32xf32>
    %219 = vector.broadcast %198 : vector<1x32xf32> to vector<9x32xf32>
    %220 = arith.addf %218, %219 : vector<9x32xf32>
    %c1 = arith.constant 1 : index
    %c0_98 = arith.constant 0 : index
    %c0_99 = arith.constant 0 : index
    %221 = vector.load %arg6[%c1, %c0_98, %c0_99] : memref<2x32x96xf32, #tpu.memory_space<vmem>>, vector<1x32x96xf32>
    %222 = vector.shape_cast %221 : vector<1x32x96xf32> to vector<32x96xf32>
    %cst_100 = arith.constant dense<0.000000e+00> : vector<9x96xf32>
    %223 = tpu.matmul %220, %222, %cst_100 {dimension_numbers = #tpu.dot_dimension_numbers<[1], [0], [0], [1], [0, 0, 1, 1], [], []>} : vector<9x32xf32>, vector<32x96xf32>, vector<9x96xf32> -> vector<9x96xf32>
    %c1_101 = arith.constant 1 : index
    %c0_102 = arith.constant 0 : index
    %c0_103 = arith.constant 0 : index
    %224 = vector.load %arg7[%c1_101, %c0_102, %c0_103] : memref<2x1x96xf32, #tpu.memory_space<vmem>>, vector<1x1x96xf32>
    %225 = vector.shape_cast %224 : vector<1x1x96xf32> to vector<1x96xf32>
    %226 = vector.broadcast %225 : vector<1x96xf32> to vector<9x96xf32>
    %227 = arith.addf %223, %226 : vector<9x96xf32>
    %c1_104 = arith.constant 1 : index
    %c0_105 = arith.constant 0 : index
    %c0_106 = arith.constant 0 : index
    %228 = vector.load %arg8[%c1_104, %c0_105, %c0_106] : memref<2x32x32xf32, #tpu.memory_space<vmem>>, vector<1x32x32xf32>
    %229 = vector.shape_cast %228 : vector<1x32x32xf32> to vector<32x32xf32>
    %c1_107 = arith.constant 1 : index
    %c0_108 = arith.constant 0 : index
    %c0_109 = arith.constant 0 : index
    %230 = vector.load %arg9[%c1_107, %c0_108, %c0_109] : memref<2x1x32xf32, #tpu.memory_space<vmem>>, vector<1x1x32xf32>
    %231 = vector.shape_cast %230 : vector<1x1x32xf32> to vector<1x32xf32>
    %232 = vector.shape_cast %231 : vector<1x32xf32> to vector<1x32xf32>
    %233 = vector.broadcast %232 : vector<1x32xf32> to vector<9x32xf32>
    %234 = vector.extract_strided_slice %227 {offsets = [0, 0], sizes = [9, 8], strides = [1, 1]} : vector<9x96xf32> to vector<9x8xf32>
    %235 = vector.extract_strided_slice %227 {offsets = [0, 32], sizes = [9, 8], strides = [1, 1]} : vector<9x96xf32> to vector<9x8xf32>
    %236 = vector.extract_strided_slice %227 {offsets = [0, 64], sizes = [9, 8], strides = [1, 1]} : vector<9x96xf32> to vector<9x8xf32>
    %237 = tpu.transpose %235, [1, 0] : vector<9x8xf32> -> vector<8x9xf32>
    %cst_110 = arith.constant dense<0.000000e+00> : vector<9x9xf32>
    %238 = tpu.matmul %234, %237, %cst_110 {dimension_numbers = #tpu.dot_dimension_numbers<[1], [0], [0], [1], [0, 0, 1, 1], [], []>} : vector<9x8xf32>, vector<8x9xf32>, vector<9x9xf32> -> vector<9x9xf32>
    %cst_111 = arith.constant 0.353553385 : f32
    %239 = vector.broadcast %cst_111 : f32 to vector<9x9xf32>
    %240 = arith.mulf %238, %239 : vector<9x9xf32>
    %cst_112 = arith.constant dense<0xFF800000> : vector<9xf32>
    %241 = vector.multi_reduction <maximumf>, %240, %cst_112 [1] : vector<9x9xf32> to vector<9xf32>
    %242 = vector.shape_cast %241 : vector<9xf32> to vector<9x1xf32>
    %243 = vector.broadcast %242 : vector<9x1xf32> to vector<9x9xf32>
    %244 = arith.subf %240, %243 : vector<9x9xf32>
    %245 = math.exp %244 : vector<9x9xf32>
    %cst_113 = arith.constant dense<0.000000e+00> : vector<9xf32>
    %246 = vector.multi_reduction <add>, %245, %cst_113 [1] : vector<9x9xf32> to vector<9xf32>
    %247 = vector.shape_cast %246 : vector<9xf32> to vector<9x1xf32>
    %248 = tpu.reciprocal %247 : vector<9x1xf32> -> vector<9x1xf32>
    %249 = vector.broadcast %248 : vector<9x1xf32> to vector<9x9xf32>
    %250 = arith.mulf %245, %249 : vector<9x9xf32>
    %cst_114 = arith.constant dense<0.000000e+00> : vector<9x8xf32>
    %251 = tpu.matmul %250, %236, %cst_114 {dimension_numbers = #tpu.dot_dimension_numbers<[1], [0], [0], [1], [0, 0, 1, 1], [], []>} : vector<9x9xf32>, vector<9x8xf32>, vector<9x8xf32> -> vector<9x8xf32>
    %252 = vector.extract_strided_slice %229 {offsets = [0, 0], sizes = [8, 32], strides = [1, 1]} : vector<32x32xf32> to vector<8x32xf32>
    %cst_115 = arith.constant dense<0.000000e+00> : vector<9x32xf32>
    %253 = tpu.matmul %251, %252, %cst_115 {dimension_numbers = #tpu.dot_dimension_numbers<[1], [0], [0], [1], [0, 0, 1, 1], [], []>} : vector<9x8xf32>, vector<8x32xf32>, vector<9x32xf32> -> vector<9x32xf32>
    %254 = arith.addf %233, %253 : vector<9x32xf32>
    %255 = vector.extract_strided_slice %227 {offsets = [0, 8], sizes = [9, 8], strides = [1, 1]} : vector<9x96xf32> to vector<9x8xf32>
    %256 = vector.extract_strided_slice %227 {offsets = [0, 40], sizes = [9, 8], strides = [1, 1]} : vector<9x96xf32> to vector<9x8xf32>
    %257 = vector.extract_strided_slice %227 {offsets = [0, 72], sizes = [9, 8], strides = [1, 1]} : vector<9x96xf32> to vector<9x8xf32>
    %258 = tpu.transpose %256, [1, 0] : vector<9x8xf32> -> vector<8x9xf32>
    %cst_116 = arith.constant dense<0.000000e+00> : vector<9x9xf32>
    %259 = tpu.matmul %255, %258, %cst_116 {dimension_numbers = #tpu.dot_dimension_numbers<[1], [0], [0], [1], [0, 0, 1, 1], [], []>} : vector<9x8xf32>, vector<8x9xf32>, vector<9x9xf32> -> vector<9x9xf32>
    %cst_117 = arith.constant 0.353553385 : f32
    %260 = vector.broadcast %cst_117 : f32 to vector<9x9xf32>
    %261 = arith.mulf %259, %260 : vector<9x9xf32>
    %cst_118 = arith.constant dense<0xFF800000> : vector<9xf32>
    %262 = vector.multi_reduction <maximumf>, %261, %cst_118 [1] : vector<9x9xf32> to vector<9xf32>
    %263 = vector.shape_cast %262 : vector<9xf32> to vector<9x1xf32>
    %264 = vector.broadcast %263 : vector<9x1xf32> to vector<9x9xf32>
    %265 = arith.subf %261, %264 : vector<9x9xf32>
    %266 = math.exp %265 : vector<9x9xf32>
    %cst_119 = arith.constant dense<0.000000e+00> : vector<9xf32>
    %267 = vector.multi_reduction <add>, %266, %cst_119 [1] : vector<9x9xf32> to vector<9xf32>
    %268 = vector.shape_cast %267 : vector<9xf32> to vector<9x1xf32>
    %269 = tpu.reciprocal %268 : vector<9x1xf32> -> vector<9x1xf32>
    %270 = vector.broadcast %269 : vector<9x1xf32> to vector<9x9xf32>
    %271 = arith.mulf %266, %270 : vector<9x9xf32>
    %cst_120 = arith.constant dense<0.000000e+00> : vector<9x8xf32>
    %272 = tpu.matmul %271, %257, %cst_120 {dimension_numbers = #tpu.dot_dimension_numbers<[1], [0], [0], [1], [0, 0, 1, 1], [], []>} : vector<9x9xf32>, vector<9x8xf32>, vector<9x8xf32> -> vector<9x8xf32>
    %273 = vector.extract_strided_slice %229 {offsets = [8, 0], sizes = [8, 32], strides = [1, 1]} : vector<32x32xf32> to vector<8x32xf32>
    %cst_121 = arith.constant dense<0.000000e+00> : vector<9x32xf32>
    %274 = tpu.matmul %272, %273, %cst_121 {dimension_numbers = #tpu.dot_dimension_numbers<[1], [0], [0], [1], [0, 0, 1, 1], [], []>} : vector<9x8xf32>, vector<8x32xf32>, vector<9x32xf32> -> vector<9x32xf32>
    %275 = arith.addf %254, %274 : vector<9x32xf32>
    %276 = vector.extract_strided_slice %227 {offsets = [0, 16], sizes = [9, 8], strides = [1, 1]} : vector<9x96xf32> to vector<9x8xf32>
    %277 = vector.extract_strided_slice %227 {offsets = [0, 48], sizes = [9, 8], strides = [1, 1]} : vector<9x96xf32> to vector<9x8xf32>
    %278 = vector.extract_strided_slice %227 {offsets = [0, 80], sizes = [9, 8], strides = [1, 1]} : vector<9x96xf32> to vector<9x8xf32>
    %279 = tpu.transpose %277, [1, 0] : vector<9x8xf32> -> vector<8x9xf32>
    %cst_122 = arith.constant dense<0.000000e+00> : vector<9x9xf32>
    %280 = tpu.matmul %276, %279, %cst_122 {dimension_numbers = #tpu.dot_dimension_numbers<[1], [0], [0], [1], [0, 0, 1, 1], [], []>} : vector<9x8xf32>, vector<8x9xf32>, vector<9x9xf32> -> vector<9x9xf32>
    %cst_123 = arith.constant 0.353553385 : f32
    %281 = vector.broadcast %cst_123 : f32 to vector<9x9xf32>
    %282 = arith.mulf %280, %281 : vector<9x9xf32>
    %cst_124 = arith.constant dense<0xFF800000> : vector<9xf32>
    %283 = vector.multi_reduction <maximumf>, %282, %cst_124 [1] : vector<9x9xf32> to vector<9xf32>
    %284 = vector.shape_cast %283 : vector<9xf32> to vector<9x1xf32>
    %285 = vector.broadcast %284 : vector<9x1xf32> to vector<9x9xf32>
    %286 = arith.subf %282, %285 : vector<9x9xf32>
    %287 = math.exp %286 : vector<9x9xf32>
    %cst_125 = arith.constant dense<0.000000e+00> : vector<9xf32>
    %288 = vector.multi_reduction <add>, %287, %cst_125 [1] : vector<9x9xf32> to vector<9xf32>
    %289 = vector.shape_cast %288 : vector<9xf32> to vector<9x1xf32>
    %290 = tpu.reciprocal %289 : vector<9x1xf32> -> vector<9x1xf32>
    %291 = vector.broadcast %290 : vector<9x1xf32> to vector<9x9xf32>
    %292 = arith.mulf %287, %291 : vector<9x9xf32>
    %cst_126 = arith.constant dense<0.000000e+00> : vector<9x8xf32>
    %293 = tpu.matmul %292, %278, %cst_126 {dimension_numbers = #tpu.dot_dimension_numbers<[1], [0], [0], [1], [0, 0, 1, 1], [], []>} : vector<9x9xf32>, vector<9x8xf32>, vector<9x8xf32> -> vector<9x8xf32>
    %294 = vector.extract_strided_slice %229 {offsets = [16, 0], sizes = [8, 32], strides = [1, 1]} : vector<32x32xf32> to vector<8x32xf32>
    %cst_127 = arith.constant dense<0.000000e+00> : vector<9x32xf32>
    %295 = tpu.matmul %293, %294, %cst_127 {dimension_numbers = #tpu.dot_dimension_numbers<[1], [0], [0], [1], [0, 0, 1, 1], [], []>} : vector<9x8xf32>, vector<8x32xf32>, vector<9x32xf32> -> vector<9x32xf32>
    %296 = arith.addf %275, %295 : vector<9x32xf32>
    %297 = vector.extract_strided_slice %227 {offsets = [0, 24], sizes = [9, 8], strides = [1, 1]} : vector<9x96xf32> to vector<9x8xf32>
    %298 = vector.extract_strided_slice %227 {offsets = [0, 56], sizes = [9, 8], strides = [1, 1]} : vector<9x96xf32> to vector<9x8xf32>
    %299 = vector.extract_strided_slice %227 {offsets = [0, 88], sizes = [9, 8], strides = [1, 1]} : vector<9x96xf32> to vector<9x8xf32>
    %300 = tpu.transpose %298, [1, 0] : vector<9x8xf32> -> vector<8x9xf32>
    %cst_128 = arith.constant dense<0.000000e+00> : vector<9x9xf32>
    %301 = tpu.matmul %297, %300, %cst_128 {dimension_numbers = #tpu.dot_dimension_numbers<[1], [0], [0], [1], [0, 0, 1, 1], [], []>} : vector<9x8xf32>, vector<8x9xf32>, vector<9x9xf32> -> vector<9x9xf32>
    %cst_129 = arith.constant 0.353553385 : f32
    %302 = vector.broadcast %cst_129 : f32 to vector<9x9xf32>
    %303 = arith.mulf %301, %302 : vector<9x9xf32>
    %cst_130 = arith.constant dense<0xFF800000> : vector<9xf32>
    %304 = vector.multi_reduction <maximumf>, %303, %cst_130 [1] : vector<9x9xf32> to vector<9xf32>
    %305 = vector.shape_cast %304 : vector<9xf32> to vector<9x1xf32>
    %306 = vector.broadcast %305 : vector<9x1xf32> to vector<9x9xf32>
    %307 = arith.subf %303, %306 : vector<9x9xf32>
    %308 = math.exp %307 : vector<9x9xf32>
    %cst_131 = arith.constant dense<0.000000e+00> : vector<9xf32>
    %309 = vector.multi_reduction <add>, %308, %cst_131 [1] : vector<9x9xf32> to vector<9xf32>
    %310 = vector.shape_cast %309 : vector<9xf32> to vector<9x1xf32>
    %311 = tpu.reciprocal %310 : vector<9x1xf32> -> vector<9x1xf32>
    %312 = vector.broadcast %311 : vector<9x1xf32> to vector<9x9xf32>
    %313 = arith.mulf %308, %312 : vector<9x9xf32>
    %cst_132 = arith.constant dense<0.000000e+00> : vector<9x8xf32>
    %314 = tpu.matmul %313, %299, %cst_132 {dimension_numbers = #tpu.dot_dimension_numbers<[1], [0], [0], [1], [0, 0, 1, 1], [], []>} : vector<9x9xf32>, vector<9x8xf32>, vector<9x8xf32> -> vector<9x8xf32>
    %315 = vector.extract_strided_slice %229 {offsets = [24, 0], sizes = [8, 32], strides = [1, 1]} : vector<32x32xf32> to vector<8x32xf32>
    %cst_133 = arith.constant dense<0.000000e+00> : vector<9x32xf32>
    %316 = tpu.matmul %314, %315, %cst_133 {dimension_numbers = #tpu.dot_dimension_numbers<[1], [0], [0], [1], [0, 0, 1, 1], [], []>} : vector<9x8xf32>, vector<8x32xf32>, vector<9x32xf32> -> vector<9x32xf32>
    %317 = arith.addf %296, %316 : vector<9x32xf32>
    %318 = arith.addf %220, %317 : vector<9x32xf32>
    %c1_134 = arith.constant 1 : index
    %c0_135 = arith.constant 0 : index
    %c0_136 = arith.constant 0 : index
    %319 = vector.load %arg14[%c1_134, %c0_135, %c0_136] : memref<2x1x32xf32, #tpu.memory_space<vmem>>, vector<1x1x32xf32>
    %320 = vector.shape_cast %319 : vector<1x1x32xf32> to vector<1x32xf32>
    %c1_137 = arith.constant 1 : index
    %c0_138 = arith.constant 0 : index
    %c0_139 = arith.constant 0 : index
    %321 = vector.load %arg15[%c1_137, %c0_138, %c0_139] : memref<2x1x32xf32, #tpu.memory_space<vmem>>, vector<1x1x32xf32>
    %322 = vector.shape_cast %321 : vector<1x1x32xf32> to vector<1x32xf32>
    %cst_140 = arith.constant dense<0.000000e+00> : vector<9xf32>
    %323 = vector.multi_reduction <add>, %318, %cst_140 [1] : vector<9x32xf32> to vector<9xf32>
    %324 = vector.shape_cast %323 : vector<9xf32> to vector<9x1xf32>
    %cst_141 = arith.constant 3.200000e+01 : f32
    %325 = vector.broadcast %cst_141 : f32 to vector<9x1xf32>
    %326 = arith.divf %324, %325 : vector<9x1xf32>
    %327 = vector.broadcast %326 : vector<9x1xf32> to vector<9x32xf32>
    %328 = arith.subf %318, %327 : vector<9x32xf32>
    %329 = arith.mulf %328, %328 : vector<9x32xf32>
    %cst_142 = arith.constant dense<0.000000e+00> : vector<9xf32>
    %330 = vector.multi_reduction <add>, %329, %cst_142 [1] : vector<9x32xf32> to vector<9xf32>
    %331 = vector.shape_cast %330 : vector<9xf32> to vector<9x1xf32>
    %cst_143 = arith.constant 3.200000e+01 : f32
    %332 = vector.broadcast %cst_143 : f32 to vector<9x1xf32>
    %333 = arith.divf %331, %332 : vector<9x1xf32>
    %334 = vector.broadcast %326 : vector<9x1xf32> to vector<9x32xf32>
    %335 = arith.subf %318, %334 : vector<9x32xf32>
    %cst_144 = arith.constant 9.99999974E-6 : f32
    %336 = vector.broadcast %cst_144 : f32 to vector<9x1xf32>
    %337 = arith.addf %333, %336 : vector<9x1xf32>
    %338 = math.rsqrt %337 : vector<9x1xf32>
    %339 = vector.broadcast %338 : vector<9x1xf32> to vector<9x32xf32>
    %340 = arith.mulf %335, %339 : vector<9x32xf32>
    %341 = vector.broadcast %320 : vector<1x32xf32> to vector<9x32xf32>
    %342 = arith.mulf %340, %341 : vector<9x32xf32>
    %343 = vector.broadcast %322 : vector<1x32xf32> to vector<9x32xf32>
    %344 = arith.addf %342, %343 : vector<9x32xf32>
    %c1_145 = arith.constant 1 : index
    %c0_146 = arith.constant 0 : index
    %c0_147 = arith.constant 0 : index
    %345 = vector.load %arg10[%c1_145, %c0_146, %c0_147] : memref<2x32x128xf32, #tpu.memory_space<vmem>>, vector<1x32x128xf32>
    %346 = vector.shape_cast %345 : vector<1x32x128xf32> to vector<32x128xf32>
    %cst_148 = arith.constant dense<0.000000e+00> : vector<9x128xf32>
    %347 = tpu.matmul %344, %346, %cst_148 {dimension_numbers = #tpu.dot_dimension_numbers<[1], [0], [0], [1], [0, 0, 1, 1], [], []>} : vector<9x32xf32>, vector<32x128xf32>, vector<9x128xf32> -> vector<9x128xf32>
    %c1_149 = arith.constant 1 : index
    %c0_150 = arith.constant 0 : index
    %c0_151 = arith.constant 0 : index
    %348 = vector.load %arg11[%c1_149, %c0_150, %c0_151] : memref<2x1x128xf32, #tpu.memory_space<vmem>>, vector<1x1x128xf32>
    %349 = vector.shape_cast %348 : vector<1x1x128xf32> to vector<1x128xf32>
    %350 = vector.broadcast %349 : vector<1x128xf32> to vector<9x128xf32>
    %351 = arith.addf %347, %350 : vector<9x128xf32>
    %cst_152 = arith.constant 5.000000e-01 : f32
    %352 = vector.broadcast %cst_152 : f32 to vector<9x128xf32>
    %353 = arith.mulf %352, %351 : vector<9x128xf32>
    %cst_153 = arith.constant 0.707106769 : f32
    %354 = vector.broadcast %cst_153 : f32 to vector<9x128xf32>
    %355 = arith.mulf %351, %354 : vector<9x128xf32>
    %356 = math.absf %355 : vector<9x128xf32>
    %cst_154 = arith.constant 0.327591091 : f32
    %357 = vector.broadcast %cst_154 : f32 to vector<9x128xf32>
    %358 = arith.mulf %357, %356 : vector<9x128xf32>
    %cst_155 = arith.constant 1.000000e+00 : f32
    %359 = vector.broadcast %cst_155 : f32 to vector<9x128xf32>
    %360 = arith.addf %359, %358 : vector<9x128xf32>
    %cst_156 = arith.constant 1.000000e+00 : f32
    %361 = vector.broadcast %cst_156 : f32 to vector<9x128xf32>
    %362 = arith.divf %361, %360 : vector<9x128xf32>
    %cst_157 = arith.constant 1.06140542 : f32
    %363 = vector.broadcast %cst_157 : f32 to vector<9x128xf32>
    %364 = arith.mulf %363, %362 : vector<9x128xf32>
    %cst_158 = arith.constant -1.45315206 : f32
    %365 = vector.broadcast %cst_158 : f32 to vector<9x128xf32>
    %366 = arith.addf %364, %365 : vector<9x128xf32>
    %367 = arith.mulf %366, %362 : vector<9x128xf32>
    %cst_159 = arith.constant 1.42141378 : f32
    %368 = vector.broadcast %cst_159 : f32 to vector<9x128xf32>
    %369 = arith.addf %367, %368 : vector<9x128xf32>
    %370 = arith.mulf %369, %362 : vector<9x128xf32>
    %cst_160 = arith.constant -0.284496725 : f32
    %371 = vector.broadcast %cst_160 : f32 to vector<9x128xf32>
    %372 = arith.addf %370, %371 : vector<9x128xf32>
    %373 = arith.mulf %372, %362 : vector<9x128xf32>
    %cst_161 = arith.constant 0.254829586 : f32
    %374 = vector.broadcast %cst_161 : f32 to vector<9x128xf32>
    %375 = arith.addf %373, %374 : vector<9x128xf32>
    %376 = arith.mulf %375, %362 : vector<9x128xf32>
    %cst_162 = arith.constant 0.000000e+00 : f32
    %377 = vector.broadcast %cst_162 : f32 to vector<9x128xf32>
    %378 = arith.subf %377, %356 : vector<9x128xf32>
    %379 = arith.mulf %378, %356 : vector<9x128xf32>
    %380 = math.exp %379 : vector<9x128xf32>
    %381 = arith.mulf %376, %380 : vector<9x128xf32>
    %cst_163 = arith.constant 1.000000e+00 : f32
    %382 = vector.broadcast %cst_163 : f32 to vector<9x128xf32>
    %383 = arith.subf %382, %381 : vector<9x128xf32>
    %cst_164 = arith.constant 0.000000e+00 : f32
    %384 = vector.broadcast %cst_164 : f32 to vector<9x128xf32>
    %385 = arith.cmpf olt, %355, %384 : vector<9x128xf32>
    %cst_165 = arith.constant 0.000000e+00 : f32
    %386 = vector.broadcast %cst_165 : f32 to vector<9x128xf32>
    %387 = arith.subf %386, %383 : vector<9x128xf32>
    %388 = arith.select %385, %387, %383 : vector<9x128xi1>, vector<9x128xf32>
    %cst_166 = arith.constant 1.000000e+00 : f32
    %389 = vector.broadcast %cst_166 : f32 to vector<9x128xf32>
    %390 = arith.addf %389, %388 : vector<9x128xf32>
    %391 = arith.mulf %353, %390 : vector<9x128xf32>
    %c1_167 = arith.constant 1 : index
    %c0_168 = arith.constant 0 : index
    %c0_169 = arith.constant 0 : index
    %392 = vector.load %arg12[%c1_167, %c0_168, %c0_169] : memref<2x128x32xf32, #tpu.memory_space<vmem>>, vector<1x128x32xf32>
    %393 = vector.shape_cast %392 : vector<1x128x32xf32> to vector<128x32xf32>
    %cst_170 = arith.constant dense<0.000000e+00> : vector<9x32xf32>
    %394 = tpu.matmul %391, %393, %cst_170 {dimension_numbers = #tpu.dot_dimension_numbers<[1], [0], [0], [1], [0, 0, 1, 1], [], []>} : vector<9x128xf32>, vector<128x32xf32>, vector<9x32xf32> -> vector<9x32xf32>
    %c1_171 = arith.constant 1 : index
    %c0_172 = arith.constant 0 : index
    %c0_173 = arith.constant 0 : index
    %395 = vector.load %arg13[%c1_171, %c0_172, %c0_173] : memref<2x1x32xf32, #tpu.memory_space<vmem>>, vector<1x1x32xf32>
    %396 = vector.shape_cast %395 : vector<1x1x32xf32> to vector<1x32xf32>
    %397 = vector.broadcast %396 : vector<1x32xf32> to vector<9x32xf32>
    %398 = arith.addf %394, %397 : vector<9x32xf32>
    %399 = arith.addf %344, %398 : vector<9x32xf32>
    %c1_174 = arith.constant 1 : index
    %c0_175 = arith.constant 0 : index
    %c0_176 = arith.constant 0 : index
    %400 = vector.load %arg16[%c1_174, %c0_175, %c0_176] : memref<2x1x32xf32, #tpu.memory_space<vmem>>, vector<1x1x32xf32>
    %401 = vector.shape_cast %400 : vector<1x1x32xf32> to vector<1x32xf32>
    %c1_177 = arith.constant 1 : index
    %c0_178 = arith.constant 0 : index
    %c0_179 = arith.constant 0 : index
    %402 = vector.load %arg17[%c1_177, %c0_178, %c0_179] : memref<2x1x32xf32, #tpu.memory_space<vmem>>, vector<1x1x32xf32>
    %403 = vector.shape_cast %402 : vector<1x1x32xf32> to vector<1x32xf32>
    %cst_180 = arith.constant dense<0.000000e+00> : vector<9xf32>
    %404 = vector.multi_reduction <add>, %399, %cst_180 [1] : vector<9x32xf32> to vector<9xf32>
    %405 = vector.shape_cast %404 : vector<9xf32> to vector<9x1xf32>
    %cst_181 = arith.constant 3.200000e+01 : f32
    %406 = vector.broadcast %cst_181 : f32 to vector<9x1xf32>
    %407 = arith.divf %405, %406 : vector<9x1xf32>
    %408 = vector.broadcast %407 : vector<9x1xf32> to vector<9x32xf32>
    %409 = arith.subf %399, %408 : vector<9x32xf32>
    %410 = arith.mulf %409, %409 : vector<9x32xf32>
    %cst_182 = arith.constant dense<0.000000e+00> : vector<9xf32>
    %411 = vector.multi_reduction <add>, %410, %cst_182 [1] : vector<9x32xf32> to vector<9xf32>
    %412 = vector.shape_cast %411 : vector<9xf32> to vector<9x1xf32>
    %cst_183 = arith.constant 3.200000e+01 : f32
    %413 = vector.broadcast %cst_183 : f32 to vector<9x1xf32>
    %414 = arith.divf %412, %413 : vector<9x1xf32>
    %415 = vector.broadcast %407 : vector<9x1xf32> to vector<9x32xf32>
    %416 = arith.subf %399, %415 : vector<9x32xf32>
    %cst_184 = arith.constant 9.99999974E-6 : f32
    %417 = vector.broadcast %cst_184 : f32 to vector<9x1xf32>
    %418 = arith.addf %414, %417 : vector<9x1xf32>
    %419 = math.rsqrt %418 : vector<9x1xf32>
    %420 = vector.broadcast %419 : vector<9x1xf32> to vector<9x32xf32>
    %421 = arith.mulf %416, %420 : vector<9x32xf32>
    %422 = vector.broadcast %401 : vector<1x32xf32> to vector<9x32xf32>
    %423 = arith.mulf %421, %422 : vector<9x32xf32>
    %424 = vector.broadcast %403 : vector<1x32xf32> to vector<9x32xf32>
    %425 = arith.addf %423, %424 : vector<9x32xf32>
    %c0_185 = arith.constant 0 : index
    %c0_186 = arith.constant 0 : index
    %c0_187 = arith.constant 0 : index
    %426 = vector.load %arg20[%c0_185, %c0_186, %c0_187] : memref<1x9x32xf32, #tpu.memory_space<vmem>>, vector<1x9x32xf32>
    %427 = vector.shape_cast %426 : vector<1x9x32xf32> to vector<9x32xf32>
    %428 = vector.shape_cast %425 : vector<9x32xf32> to vector<1x9x32xf32>
    tpu.vector_store %arg20[%c0_185, %c0_186, %c0_187], %428 {strides = array<i32>} : memref<1x9x32xf32, #tpu.memory_space<vmem>>, vector<1x9x32xf32>,
    %429 = vector.extract_strided_slice %425 {offsets = [8, 0], sizes = [1, 32], strides = [1, 1]} : vector<9x32xf32> to vector<1x32xf32>
    %c0_188 = arith.constant 0 : index
    %c0_189 = arith.constant 0 : index
    %430 = vector.load %arg18[%c0_188, %c0_189] : memref<1x32xf32, #tpu.memory_space<vmem>>, vector<1x32xf32>
    %c0_190 = arith.constant 0 : index
    %c0_191 = arith.constant 0 : index
    %431 = vector.load %arg19[%c0_190, %c0_191] : memref<1x32xf32, #tpu.memory_space<vmem>>, vector<1x32xf32>
    %cst_192 = arith.constant dense<0.000000e+00> : vector<1xf32>
    %432 = vector.multi_reduction <add>, %429, %cst_192 [1] : vector<1x32xf32> to vector<1xf32>
    %433 = vector.shape_cast %432 : vector<1xf32> to vector<1x1xf32>
    %cst_193 = arith.constant 3.200000e+01 : f32
    %434 = vector.broadcast %cst_193 : f32 to vector<1x1xf32>
    %435 = arith.divf %433, %434 : vector<1x1xf32>
    %436 = vector.broadcast %435 : vector<1x1xf32> to vector<1x32xf32>
    %437 = arith.subf %429, %436 : vector<1x32xf32>
    %438 = arith.mulf %437, %437 : vector<1x32xf32>
    %cst_194 = arith.constant dense<0.000000e+00> : vector<1xf32>
    %439 = vector.multi_reduction <add>, %438, %cst_194 [1] : vector<1x32xf32> to vector<1xf32>
    %440 = vector.shape_cast %439 : vector<1xf32> to vector<1x1xf32>
    %cst_195 = arith.constant 3.200000e+01 : f32
    %441 = vector.broadcast %cst_195 : f32 to vector<1x1xf32>
    %442 = arith.divf %440, %441 : vector<1x1xf32>
    %443 = vector.broadcast %435 : vector<1x1xf32> to vector<1x32xf32>
    %444 = arith.subf %429, %443 : vector<1x32xf32>
    %cst_196 = arith.constant 9.99999974E-6 : f32
    %445 = vector.broadcast %cst_196 : f32 to vector<1x1xf32>
    %446 = arith.addf %442, %445 : vector<1x1xf32>
    %447 = math.rsqrt %446 : vector<1x1xf32>
    %448 = vector.broadcast %447 : vector<1x1xf32> to vector<1x32xf32>
    %449 = arith.mulf %444, %448 : vector<1x32xf32>
    %450 = arith.mulf %449, %430 : vector<1x32xf32>
    %451 = arith.addf %450, %431 : vector<1x32xf32>
    %c0_197 = arith.constant 0 : index
    %c0_198 = arith.constant 0 : index
    %c0_199 = arith.constant 0 : index
    %452 = vector.load %arg21[%c0_197, %c0_198, %c0_199] : memref<1x1x32xf32, #tpu.memory_space<vmem>>, vector<1x1x32xf32>
    %453 = vector.shape_cast %452 : vector<1x1x32xf32> to vector<1x32xf32>
    %454 = vector.shape_cast %451 : vector<1x32xf32> to vector<1x1x32xf32>
    tpu.vector_store %arg21[%c0_197, %c0_198, %c0_199], %454 {strides = array<i32>} : memref<1x1x32xf32, #tpu.memory_space<vmem>>, vector<1x1x32xf32>,
    return
  }
  func.func @transform_0(%arg0: i32) -> (i32, i32, i32) {
    %c0_i32 = arith.constant 0 : i32
    %c0_i32_0 = arith.constant 0 : i32
    %c0_i32_1 = arith.constant 0 : i32
    return %arg0, %c0_i32, %c0_i32_0 : i32, i32, i32
  }
  func.func @transform_1(%arg0: i32) -> (i32, i32) {
    %c0_i32 = arith.constant 0 : i32
    %c0_i32_0 = arith.constant 0 : i32
    %c0_i32_1 = arith.constant 0 : i32
    return %c0_i32, %c0_i32_0 : i32, i32
  }
  func.func @transform_2(%arg0: i32) -> (i32, i32) {
    %c0_i32 = arith.constant 0 : i32
    %c0_i32_0 = arith.constant 0 : i32
    %c0_i32_1 = arith.constant 0 : i32
    return %c0_i32, %c0_i32_0 : i32, i32
  }
  func.func @transform_3(%arg0: i32) -> (i32, i32) {
    %c0_i32 = arith.constant 0 : i32
    %c0_i32_0 = arith.constant 0 : i32
    %c0_i32_1 = arith.constant 0 : i32
    return %c0_i32, %c0_i32_0 : i32, i32
  }
  func.func @transform_4(%arg0: i32) -> (i32, i32) {
    %c0_i32 = arith.constant 0 : i32
    %c0_i32_0 = arith.constant 0 : i32
    %c0_i32_1 = arith.constant 0 : i32
    return %c0_i32, %c0_i32_0 : i32, i32
  }
  func.func @transform_5(%arg0: i32) -> (i32, i32, i32) {
    %c0_i32 = arith.constant 0 : i32
    %c0_i32_0 = arith.constant 0 : i32
    %c0_i32_1 = arith.constant 0 : i32
    %c0_i32_2 = arith.constant 0 : i32
    return %c0_i32, %c0_i32_0, %c0_i32_1 : i32, i32, i32
  }
  func.func @transform_6(%arg0: i32) -> (i32, i32, i32) {
    %c0_i32 = arith.constant 0 : i32
    %c0_i32_0 = arith.constant 0 : i32
    %c0_i32_1 = arith.constant 0 : i32
    %c0_i32_2 = arith.constant 0 : i32
    return %c0_i32, %c0_i32_0, %c0_i32_1 : i32, i32, i32
  }
  func.func @transform_7(%arg0: i32) -> (i32, i32, i32) {
    %c0_i32 = arith.constant 0 : i32
    %c0_i32_0 = arith.constant 0 : i32
    %c0_i32_1 = arith.constant 0 : i32
    %c0_i32_2 = arith.constant 0 : i32
    return %c0_i32, %c0_i32_0, %c0_i32_1 : i32, i32, i32
  }
  func.func @transform_8(%arg0: i32) -> (i32, i32, i32) {
    %c0_i32 = arith.constant 0 : i32
    %c0_i32_0 = arith.constant 0 : i32
    %c0_i32_1 = arith.constant 0 : i32
    %c0_i32_2 = arith.constant 0 : i32
    return %c0_i32, %c0_i32_0, %c0_i32_1 : i32, i32, i32
  }
  func.func @transform_9(%arg0: i32) -> (i32, i32, i32) {
    %c0_i32 = arith.constant 0 : i32
    %c0_i32_0 = arith.constant 0 : i32
    %c0_i32_1 = arith.constant 0 : i32
    %c0_i32_2 = arith.constant 0 : i32
    return %c0_i32, %c0_i32_0, %c0_i32_1 : i32, i32, i32
  }
  func.func @transform_10(%arg0: i32) -> (i32, i32, i32) {
    %c0_i32 = arith.constant 0 : i32
    %c0_i32_0 = arith.constant 0 : i32
    %c0_i32_1 = arith.constant 0 : i32
    %c0_i32_2 = arith.constant 0 : i32
    return %c0_i32, %c0_i32_0, %c0_i32_1 : i32, i32, i32
  }
  func.func @transform_11(%arg0: i32) -> (i32, i32, i32) {
    %c0_i32 = arith.constant 0 : i32
    %c0_i32_0 = arith.constant 0 : i32
    %c0_i32_1 = arith.constant 0 : i32
    %c0_i32_2 = arith.constant 0 : i32
    return %c0_i32, %c0_i32_0, %c0_i32_1 : i32, i32, i32
  }
  func.func @transform_12(%arg0: i32) -> (i32, i32, i32) {
    %c0_i32 = arith.constant 0 : i32
    %c0_i32_0 = arith.constant 0 : i32
    %c0_i32_1 = arith.constant 0 : i32
    %c0_i32_2 = arith.constant 0 : i32
    return %c0_i32, %c0_i32_0, %c0_i32_1 : i32, i32, i32
  }
  func.func @transform_13(%arg0: i32) -> (i32, i32, i32) {
    %c0_i32 = arith.constant 0 : i32
    %c0_i32_0 = arith.constant 0 : i32
    %c0_i32_1 = arith.constant 0 : i32
    %c0_i32_2 = arith.constant 0 : i32
    return %c0_i32, %c0_i32_0, %c0_i32_1 : i32, i32, i32
  }
  func.func @transform_14(%arg0: i32) -> (i32, i32, i32) {
    %c0_i32 = arith.constant 0 : i32
    %c0_i32_0 = arith.constant 0 : i32
    %c0_i32_1 = arith.constant 0 : i32
    %c0_i32_2 = arith.constant 0 : i32
    return %c0_i32, %c0_i32_0, %c0_i32_1 : i32, i32, i32
  }
  func.func @transform_15(%arg0: i32) -> (i32, i32, i32) {
    %c0_i32 = arith.constant 0 : i32
    %c0_i32_0 = arith.constant 0 : i32
    %c0_i32_1 = arith.constant 0 : i32
    %c0_i32_2 = arith.constant 0 : i32
    return %c0_i32, %c0_i32_0, %c0_i32_1 : i32, i32, i32
  }
  func.func @transform_16(%arg0: i32) -> (i32, i32, i32) {
    %c0_i32 = arith.constant 0 : i32
    %c0_i32_0 = arith.constant 0 : i32
    %c0_i32_1 = arith.constant 0 : i32
    %c0_i32_2 = arith.constant 0 : i32
    return %c0_i32, %c0_i32_0, %c0_i32_1 : i32, i32, i32
  }
  func.func @transform_17(%arg0: i32) -> (i32, i32) {
    %c0_i32 = arith.constant 0 : i32
    %c0_i32_0 = arith.constant 0 : i32
    %c0_i32_1 = arith.constant 0 : i32
    return %c0_i32, %c0_i32_0 : i32, i32
  }
  func.func @transform_18(%arg0: i32) -> (i32, i32) {
    %c0_i32 = arith.constant 0 : i32
    %c0_i32_0 = arith.constant 0 : i32
    %c0_i32_1 = arith.constant 0 : i32
    return %c0_i32, %c0_i32_0 : i32, i32
  }
  func.func @transform_19(%arg0: i32) -> (i32, i32, i32) {
    %c0_i32 = arith.constant 0 : i32
    %c0_i32_0 = arith.constant 0 : i32
    %c0_i32_1 = arith.constant 0 : i32
    return %arg0, %c0_i32, %c0_i32_0 : i32, i32, i32
  }
  func.func @transform_20(%arg0: i32) -> (i32, i32, i32) {
    %c0_i32 = arith.constant 0 : i32
    %c0_i32_0 = arith.constant 0 : i32
    %c0_i32_1 = arith.constant 0 : i32
    return %arg0, %c0_i32, %c0_i32_0 : i32, i32, i32
  }
}

</mosaic_0001>

<bundles_post_ra>
// kernel: sst_forward.1
= control target key start
LH: loop header
LB: loop body
LE: loop exit
PB: predicated region body
PF: predicated region fallthrough
CT: control target
= control target key end

     0   :  { %s5900_s0 = inlined_call_operand.vmem [shape: f32[2,9,32], index: 0, kind: input, shape index: {}]   ;;  %s5901_s1 = inlined_call_operand.vmem [shape: f32[1,32], index: 1, kind: input, shape index: {}]   ;;  %s5902_s2 = inlined_call_operand.vmem [shape: f32[32,32], index: 2, kind: input, shape index: {}]   ;;  %s5903_s3 = inlined_call_operand.vmem [shape: f32[1,32], index: 3, kind: input, shape index: {}]   ;;  %s5904_s4 = inlined_call_operand.vmem [shape: f32[9,32], index: 4, kind: input, shape index: {}]   ;;  %s5905_s5 = inlined_call_operand.vmem [shape: f32[2,32,96], index: 5, kind: input, shape index: {}]   ;;  %s5906_s6 = inlined_call_operand.vmem [shape: f32[2,1,96], index: 6, kind: input, shape index: {}]   ;;  %s5907_s7 = inlined_call_operand.vmem [shape: f32[2,32,32], index: 7, kind: input, shape index: {}]   ;;  %s5908_s8 = inlined_call_operand.vmem [shape: f32[2,1,32], index: 8, kind: input, shape index: {}]   ;;  %s5909_s9 = inlined_call_operand.vmem [shape: f32[2,32,128], index: 9, kind: input, shape index: {}]   ;;  %s5910_s10 = inlined_call_operand.vmem [shape: f32[2,1,128], index: 10, kind: input, shape index: {}]   ;;  %s5911_s11 = inlined_call_operand.vmem [shape: f32[2,128,32], index: 11, kind: input, shape index: {}]   ;;  %s5912_s12 = inlined_call_operand.vmem [shape: f32[2,1,32], index: 12, kind: input, shape index: {}]   ;;  %s5913_s13 = inlined_call_operand.vmem [shape: f32[2,1,32], index: 13, kind: input, shape index: {}]   ;;  %s5914_s14 = inlined_call_operand.vmem [shape: f32[2,1,32], index: 14, kind: input, shape index: {}]   ;;  %s5915_s15 = inlined_call_operand.vmem [shape: f32[2,1,32], index: 15, kind: input, shape index: {}]   ;;  %s5916_s16 = inlined_call_operand.vmem [shape: f32[2,1,32], index: 16, kind: input, shape index: {}]   ;;  %s5917_s17 = inlined_call_operand.vmem [shape: f32[1,32], index: 17, kind: input, shape index: {}]   ;;  %s5918_s18 = inlined_call_operand.vmem [shape: f32[1,32], index: 18, kind: input, shape index: {}]   ;;  %s5919_s19 = inlined_call_operand.vmem [shape: f32[2,9,32], index: 19, kind: output, shape index: {0}]   ;;  %s5920_s20 = inlined_call_operand.hbm [shape: f32[2,1,32], index: 20, kind: output, shape index: {1}]  }
   0x1   :  { %5943 = sst [smem:[#allocation11_spill]] %s5900_s0 }
   0x2   :  { %5944 = sst [smem:[#allocation12_spill]] %s5901_s1 }
   0x3   :  { %5945 = sst [smem:[#allocation13_spill]] %s5902_s2 }
   0x4   :  { %5946 = sst [smem:[#allocation14_spill]] %s5903_s3 }
   0x5   :  { %5947 = sst [smem:[#allocation15_spill]] %s5904_s4 }
   0x6   :  { %26 = vsyncpa [#allocation3], 0 }
   0x7   :  { %28 = vsyncpa [#allocation3 + $0x1], 0  ;;  %s5261_s1 = smov 0   ;;  %s5263_s22 = smov 0  }
   0x8   :  { %s5265_s23 = smov 0   ;;  %s5267_s24 = smov 0  }
   0x9 LB: > { %5948 = sst [smem:[#allocation5_spill]] %s5129_s1  ;;  %s5282_s2 = sadd.s32 4294967295, %s5141_s24   ;;  %s5141_s24 = sphi %s5267_s24, %s5978_s24   ;;  %s5137_s23 = sphi %s5265_s23, %s5980_s23   ;;  %s5133_s22 = sphi %s5263_s22, %s5982_s22   ;;  %s5129_s1 = sphi %s5261_s1, %s5981_s1  }
   0xa   : > { %5949 = sst [smem:[#allocation6_spill]] %s5137_s23  ;;  %s4054_s25 = sadd.s32 4294967294, %s5141_s24  }
   0xb   : > { %5950 = sst [smem:[#allocation7_spill]] %s5141_s24  ;;  %s5286_s3 = sadd.s32 1, %s5141_s24  }
   0xc   : > { %5951 = sst [smem:[#allocation8_spill]] %s5286_s3  ;;  %s471_s26 = sadd.s32 1, %s5137_s23 }
   0xd   : > { %s468_s27 = ssub.s32 %s5141_s24, %s5286_s3  ;;  %p481_p0 = scmp.ne.s32.totalorder %s5137_s23, %s5133_s22 }
   0xe   : > { %p469_p1 = scmp.eq.s32.totalorder %s468_s27, 0  ;;  %p482_p2 = scmp.eq.s32.totalorder %s5282_s2, 1 }
   0xf   : > { %p487_p3 = scmp.ne.s32.totalorder %s5133_s22, %s5129_s1  ;;  %p488_p4 = scmp.eq.s32.totalorder %s4054_s25, 1 }
  0x10   : > { %s5297_s28 = scalar_select %p469_p1, %s5137_s23, %s471_s26  }
  0x11   : > { %p5299_p5 = por %p482_p2, %p481_p0  ;;  %p5303_p6 = por %p488_p4, %p487_p3 }
  0x12   : > { %5952 = sst [smem:[#allocation9_spill]] %s5297_s28  ;;  %p4057_p7 = scmp.ge.s32.totalorder %s5141_s24, 1 }
  0x13   : > { %s5954_s29 = scalar_select %p5303_p6, 1, 0 }
  0x14   : > { %p568_p8 = scmp.lt.s32.totalorder %s5141_s24, 3 }
  0x15   : > { %5955 = sst [smem:[#allocation10_spill]] %s5954_s29 }
  0x16   : > { %p569_p9 = pnand %p4057_p7, %p568_p8 }
  0x17   : > { %s5956_s21 = sld [smem:[#allocation13_spill]] (!%p569_p9)  ;;  %p630_p10 = scmp.lt.s32.totalorder (!%p569_p9), %s5282_s2, 1  ;;  %v753_v6 = vld [vmem:[%s5905_s5] sm:$0xff] (!%p569_p9)  ;;  %v754_v7 = vld [vmem:[%s5905_s5 + $0x8] sm:$0xff] (!%p569_p9)  ;;  %vm653_vm0 = vcmask (!%p569_p9), 261120   ;;  %v755_v11 = vld [vmem:[%s5905_s5 + $0x10] sm:$0xff] (!%p569_p9)  ;;  %v735_v14 = vlaneseq (!%p569_p9) }
  0x18   : > { %572 = sbr.rel (%p569_p9) target bundleno = 7691 (0x1e0b), region = 96  ;;  %s5957_s27 = sld [smem:[#allocation11_spill]] (!%p569_p9)  ;;  %v4642_v8 = vpack.c.bf16 (!%p569_p9), %v754_v7, %v753_v6  ;;  %v756_v12 = vld [vmem:[%s5905_s5 + $0x18] sm:$0xff] (!%p569_p9)  ;;  %v4066_v28 = vld [vmem:[%s5906_s6] ss:$0 sm:$0xff] (!%p569_p9)  ;;  %vm862_vm2 = vcmask (!%p569_p9), 64512  }
  0x19   : > { %v4646_v13 = vpack.c.bf16 (!%p569_p9), %v756_v12, %v755_v11  ;;  %v736_v15 = vshrl.u32 (!%p569_p9), %v735_v14, 7  ;;  %s5958_s3 = sld [smem:[#allocation14_spill]] (!%p569_p9)  ;;  %s5959_s1 = sld [smem:[#allocation12_spill]] (!%p569_p9)  ;;  %vm5380_vm3 = vmpackc.low (!%p569_p9), %vm862_vm2, %vm862_vm2  ;;  %vm952_vm4 = vcmask (!%p569_p9), 65536   ;;  %vm948_vm5 = vcmask (!%p569_p9), 72704   ;;  %v845_v7 = vld [vmem:[%s5907_s7] sm:$0xff] (!%p569_p9) }
  0x1a   : > { %s5960_s25 = sld [smem:[#allocation15_spill]] (!%p569_p9)  ;;  %s5940_s24 = smov (!%p569_p9), 120   ;;  %vm983_vm6 = vcmask (!%p569_p9), 1040384   ;;  %vm5150_vm7 = vmmov (!%p569_p9), 1   ;;  %vm2009_vm9 = vcmask (!%p569_p9), 253952  }
  0x1b   : > { %v737_v16 = vadd.s32 (!%p569_p9), 8, %v736_v15  ;;  %s5144_s23 = smov (!%p569_p9), 96   ;;  %s5937_s30 = smov (!%p569_p9), 56   ;;  %vm5408_vm8 = vmpackc.low (!%p569_p9), %vm983_vm6, %vm5150_vm7 }
  0x1c   : > { %s5931_s0 = smov (!%p569_p9), 104   ;;  %s5934_s26 = smov (!%p569_p9), 80  }
  0x1d   : > { %v642_v0 = vld [vmem:[%s5956_s21] sm:$0xff] (!%p569_p9)  ;;  %v643_v1 = vld [vmem:[%s5956_s21 + $0x8] sm:$0xff] (!%p569_p9)  ;;  %v644_v2 = vld [vmem:[%s5956_s21 + $0x10] sm:$0xff] (!%p569_p9)  ;;  %vm746_vm1 = vcmp.eq.s32.totalorder (!%p569_p9), %v737_v16, 8 }
  0x1e   : > { %v4634_v3 = vpack.c.bf16 (!%p569_p9), %v643_v1, %v642_v0  ;;  %v645_v4 = vld [vmem:[%s5956_s21 + $0x18] sm:$0xff] (!%p569_p9) }
  0x1f   : > { %v4638_v5 = vpack.c.bf16 %v645_v4, %v644_v2  ;;  %s5323_s29 = scalar_select %p630_p10, %s5282_s2, 1  ;;  %v4062_v17 = vld [vmem:[%s5958_s3] ss:$0 sm:$0xff] }
  0x20   : > { %4635 = vmatprep.subr.bf16.mxu1 %v4634_v3  ;;  %v4065_v19 = vld [vmem:[%s5959_s1] ss:$0 sm:$0xff]  ;;  %v750_v21 = vld [vmem:[%s5960_s25 + $0x8] sm:$0x1]  ;;  %s5146_s3 = smov 64   ;;  %s5933_s1 = smov 72  }
  0x21   : > { %4637 = vmatpush3.bf16.msra.mxu1 %v4634_v3  ;;  %s5928_s28 = sshll.u32 %s5323_s29, 4  ;;  %v749_v23 = vld [vmem:[%s5960_s25] sm:$0xff] }
  0x22   : > { %4639 = vmatprep.subr.bf16.mxu1 %v4638_v5  ;;  %s634_s21 = scalar_lea.vmem %s5957_s27, %s5928_s28  ;;  %s5938_s27 = smov 112  }
  0x23   : > { %v640_v9 = vld [vmem:[%s634_s21] sm:$0xff]  ;;  %v641_v10 = vld [vmem:[%s634_s21 + $0x8] sm:$0x1]  ;;  %s5942_s21 = smov 88   ;;  %s5936_s28 = smov 48  }
  0x24   : > { %4365 = vmatprep.mubr.msk.f32.mxu1 %vm653_vm0, %v640_v9 }
  0x25   : > { %4641 = vmatpush3.bf16.msra.mxu1 %v4638_v5 }
  0x26   : > { %4643 = vmatprep.subr.bf16.mxu1 %v4642_v8 }
  0x28   : > { %4366 = vmatmul.mubr.msk.f32.vlgmr.msra.gmra.mrb[0].mxu1 %vm653_vm0, %v641_v10 }
  0x29   : > { %4645 = vmatpush3.bf16.msra.mxu1 %v4642_v8 }
  0x2a   : > { %4647 = vmatprep.subr.bf16.mxu1 %v4646_v13 }
  0x2d   : > { %4649 = vmatpush3.bf16.msra.mxu1 %v4646_v13 }
  0xfb   : > { %v4367_v18 = vpop.f32.mrb[0].mxu1 }
  0xfc   : > { %v732_v20 = vadd.f32 %v4367_v18, %v4062_v17  ;;  %v726_v22 = vpop.f32.mrb[1].mxu1 }
  0xfd   : > { %v727_v24 = vadd.f32 %v4062_v17, %v726_v22 }
  0xfe   : > { %v748_v25 = vsel %vm746_vm1, %v4065_v19, %v732_v20 }
  0xff   : > { %v5357_v26 = vadd.f32 %v750_v21, %v748_v25  ;;  %v5359_v27 = vadd.f32 %v749_v23, %v727_v24 }
 0x101   : > { %4376 = vmatprep.mubr.msk.f32.mxu1 %vm653_vm0, %v5359_v27 }
 0x102   : > { %4377 = vmatmul.mubr.msk.f32.vlgmr.msra.gmra.mrb[2].mxu1 %vm653_vm0, %v5357_v26 }
 0x1d5   : > { %v4378_v29 = vpop.f32.mrb[2].mxu1 }
 0x1d6   : > { %v842_v30 = vadd.f32 %v4378_v29, %v4066_v28  ;;  %v836_v31 = vpop.f32.mrb[3].mxu1 }
 0x1d7   : > { %v837_v32 = vadd.f32 %v4066_v28, %v836_v31 }
 0x1d9   : > { %1144 = vrot.lane.b32.xlu1 %v837_v32, %s5940_s24  ;;  %4383 = vmatprep.mubr.msk.f32.mxu1 %vm862_vm2, %v837_v32  ;;  %v5370_v33 = vpack.i.bf16 %v842_v30, %v837_v32 }
 0x1db   : > { %4902 = vrot.lane.b32.xlu0 %v5370_v33, %s5144_s23 }
 0x1dd   : > { %1146 = vrot.lane.b32.xlu1 %v842_v30, %s5940_s24  ;;  %s5970_s24 = smov 72  }
 0x1df   : > { %4907 = vrot.lane.b32.xlu0 %v5370_v33, %s5942_s21  ;;  %s5971_s21 = smov 104  }
 0x24b   : > { %v1145_v34 = vpop.permute.xlu1 %1144 }
 0x24c   : > { %4402 = vmatprep.mubr.msk.f32.mxu0 %vm862_vm2, %v1145_v34 }
 0x24d   : > { %v4903_v35 = vpop.permute.xlu0 %4902 }
 0x24e   : > { %v4905_v36 = vunpack.i.h.bf16 %v4903_v35  ;;  %v4904_v37 = vunpack.i.l.bf16 %v4903_v35 }
 0x24f   : > { %v1147_v44 = vpop.permute.xlu1 %1146 }
 0x250   : > { %v4650_v39 = vpack.c.bf16 %v4905_v36, %v4904_v37 }
 0x251   : > { %v4908_v40 = vpop.permute.xlu0 %4907 }
 0x252   : > { %v4910_v41 = vunpack.i.h.bf16 %v4908_v40  ;;  %v4909_v42 = vunpack.i.l.bf16 %v4908_v40  ;;  %4652 = vmatprep.subr.msk.bf16.mxu1 %vm5380_vm3, %v4650_v39 }
 0x253   : > { %4655 = vmatpush3.bf16.xpose.msk.msra.mxu1 %vm5380_vm3, %v4650_v39 }
 0x254   : > { %v4662_v43 = vpack.c.bf16 %v4910_v41, %v4909_v42 }
 0x256   : > { %4664 = vmatprep.subr.msk.bf16.mxu0 %vm5380_vm3, %v4662_v43 }
 0x257   : > { %4667 = vmatpush3.bf16.xpose.msk.msra.mxu0 %vm5380_vm3, %v4662_v43 }
 0x25a   : > { %4384 = vmatmul.mubr.msk.f32.vlgmr.msra.gmra.mrb[4].mxu1 %vm862_vm2, %v842_v30 }
 0x25e   : > { %4403 = vmatmul.mubr.msk.f32.vlgmr.msra.gmra.mrb[0].mxu0 %vm862_vm2, %v1147_v44 }
 0x32d   : > { %v4385_v45 = vpop.f32.mrb[4].mxu1 }
 0x32e   : > { %v947_v46 = vmul.f32 0.35355338, %v4385_v45  ;;  %v937_v47 = vpop.f32.mrb[5].mxu1 }
 0x32f   : > { %v946_v48 = vmul.f32 0.35355338, %v937_v47 }
 0x330   : > { %v953_v49 = vsel %vm952_vm4, %v947_v46, -inf }
 0x331   : > { %v4404_v50 = vpop.f32.mrb[0].mxu0  ;;  %954 = vmax.xlane.f32.xlu1 %v953_v49  ;;  %v949_v51 = vsel %vm948_vm5, %v946_v48, -inf }
 0x332   : > { %v1226_v52 = vpop.f32.mrb[1].mxu0  ;;  %950 = vmax.xlane.f32.xlu0 %v949_v51  ;;  %v5400_v53 = vmul.f32 0.35355338, %v4404_v50 }
 0x333   : > { %v1235_v8 = vmul.f32 0.35355338, %v1226_v52 }
 0x334   : > { %v1240_v54 = vsel %vm952_vm4, %v5400_v53, -inf }
 0x335   : > { %v1237_v9 = vsel %vm948_vm5, %v1235_v8, -inf }
 0x342   : > { %4912 = vrot.lane.b32.xlu1 %v5370_v33, %s5146_s3 }
 0x346   : > { %1430 = vrot.lane.b32.xlu1 %v837_v32, %s5938_s27 }
 0x34a   : > { %1432 = vrot.lane.b32.xlu1 %v842_v30, %s5938_s27  ;;  %s5969_s27 = smov 80  }
 0x36e   : > { %1241 = vmax.xlane.f32.xlu1 %v1240_v54 }
 0x37f   : > { %4922 = vrot.lane.b32.xlu1 %v5370_v33, %s5937_s30  ;;  %s4198_s30 = sshll.u32 %s5282_s2, 4  ;;  %s5155_s2 = smov [#allocation2]  }
 0x383   : > { %1716 = vrot.lane.b32.xlu1 %v837_v32, %s5931_s0 }
 0x387   : > { %1718 = vrot.lane.b32.xlu1 %v842_v30, %s5931_s0  ;;  %s5966_s0 = smov 120  }
 0x3be   : > { %v955_v55 = vpop.xlane.xlu1 %954 }
 0x3bf   : > { %v957_v56 = vsub.f32 %v947_v46, %v955_v55  ;;  %v951_v57 = vpop.xlane.xlu0 %950 }
 0x3c0   : > { %v956_v58 = vsub.f32 %v946_v48, %v951_v57 }
 0x3c1   : > { %v960_v59 = vmul.f32 1.442695, %v957_v56 }
 0x3c2   : > { %v958_v60 = vmul.f32 1.442695, %v956_v58  ;;  %v4913_v61 = vpop.permute.xlu1 %4912 }
 0x3c3   : > { %v4915_v62 = vunpack.i.h.bf16 %v4913_v61  ;;  %v4914_v63 = vunpack.i.l.bf16 %v4913_v61 }
 0x3c4   : > { %4981 = vpow2.f32 %v958_v60 }
 0x3c5   : > { %v4656_v1 = vpack.c.bf16 %v4915_v62, %v4914_v63  ;;  %4983 = vpow2.f32 %v960_v59  ;;  %v846_v59 = vld [vmem:[%s5907_s7 + $0x8] sm:$0xff] }
 0x3c6   : > { %v1431_v2 = vpop.permute.xlu1 %1430 }
 0x3c7   : > { %4658 = vmatprep.subr.msk.bf16.mxu1 %vm5408_vm8, %v4656_v1  ;;  %4421 = vmatprep.mubr.msk.f32.mxu0 %vm862_vm2, %v1431_v2 }
 0x3c8   : > { %4661 = vmatpush3.bf16.msk.msra.mxu1 %vm5408_vm8, %v4656_v1 }
 0x3c9   : > { %4393 = vmatprep.subr.mxu1 %v845_v7 }
 0x3ca   : > { %v1433_v11 = vpop.permute.xlu1 %1432 }
 0x3ce   : > { %v4982_v3 = vpop.eup %4981 }
 0x3cf   : > { %v962_v4 = vsel %vm948_vm5, %v4982_v3, 0.0  ;;  %v4984_v5 = vpop.eup %4983 }
 0x3d0   : > { %963 = vadd.xlane.f32.xlu0 %v962_v4  ;;  %v965_v6 = vsel %vm952_vm4, %v4984_v5, 0.0 }
 0x3d4   : > { %966 = vadd.xlane.f32.xlu0 %v965_v6 }
 0x3ea   : > { %4917 = vrot.lane.b32.xlu0 %v5370_v33, %s5934_s26  ;;  %s5935_s26 = smov 40  }
 0x3fb   : > { %v1242_v13 = vpop.xlane.xlu1 %1241 }
 0x3fc   : > { %v1244_v29 = vsub.f32 %v5400_v53, %v1242_v13 }
 0x3fe   : > { %v1247_v32 = vmul.f32 1.442695, %v1244_v29 }
 0x3ff   : > { %v4923_v18 = vpop.permute.xlu1 %4922 }
 0x400   : > { %v4925_v21 = vunpack.i.h.bf16 %v4923_v18  ;;  %v4924_v22 = vunpack.i.l.bf16 %v4923_v18 }
 0x402   : > { %v4668_v25 = vpack.c.bf16 %v4925_v21, %v4924_v22 }
 0x403   : > { %v1717_v28 = vpop.permute.xlu1 %1716 }
 0x407   : > { %v1719_v56 = vpop.permute.xlu1 %1718 }
 0x409   : > { %1238 = vmax.xlane.f32.xlu0 %v1237_v9 }
 0x45d   : > { %v964_v10 = vpop.xlane.xlu0 %963 }
 0x45e   : > { %4985 = vrcp.f32 %v964_v10 }
 0x461   : > { %v967_v12 = vpop.xlane.xlu0 %966 }
 0x462   : > { %4987 = vrcp.f32 %v967_v12 }
 0x465   : > { %v4918_v14 = vpop.permute.xlu0 %4917 }
 0x466   : > { %v4920_v15 = vunpack.i.h.bf16 %v4918_v14  ;;  %v4919_v16 = vunpack.i.l.bf16 %v4918_v14 }
 0x468   : > { %v4986_v17 = vpop.eup %4985  ;;  %v4674_v19 = vpack.c.bf16 %v4920_v15, %v4919_v16  ;;  %v847_v15 = vld [vmem:[%s5907_s7 + $0x10] sm:$0xff] }
 0x469   : > { %v970_v20 = vmul.f32 %v4986_v17, %v4982_v3 }
 0x46a   : > { %4676 = vmatprep.subr.msk.bf16.mxu0 %vm5380_vm3, %v4674_v19 }
 0x46b   : > { %4390 = vmatprep.mubr.msk.f32.mxu1 %vm948_vm5, %v970_v20  ;;  %4679 = vmatpush3.bf16.xpose.msk.msra.mxu0 %vm5380_vm3, %v4674_v19 }
 0x46c   : > { %v4988_v23 = vpop.eup %4987 }
 0x46d   : > { %v971_v24 = vmul.f32 %v4988_v23, %v4984_v5 }
 0x46f   : > { %4391 = vmatmul.mubr.msk.f32.vlgmr.msra.gmra.mrb[6].mxu1 %vm948_vm5, %v971_v24 }
 0x470   : > { %4394 = vmatpush3.msra.mxu1 %v845_v7 }
 0x471   : > { %4670 = vmatprep.subr.msk.bf16.mxu1 %vm5408_vm8, %v4668_v25 }
 0x472   : > { %4422 = vmatmul.mubr.msk.f32.vlgmr.msra.gmra.mrb[2].mxu0 %vm862_vm2, %v1433_v11 }
 0x473   : > { %4440 = vmatprep.mubr.msk.f32.mxu0 %vm862_vm2, %v1717_v28 }
 0x496   : > { %v1239_v30 = vpop.xlane.xlu0 %1238 }
 0x497   : > { %v1243_v31 = vsub.f32 %v1235_v8, %v1239_v30 }
 0x499   : > { %v1245_v34 = vmul.f32 1.442695, %v1243_v31 }
 0x49b   : > { %4989 = vpow2.f32 %v1245_v34 }
 0x49c   : > { %4991 = vpow2.f32 %v1247_v32 }
 0x4a5   : > { %v4990_v35 = vpop.eup %4989 }
 0x4a6   : > { %v1249_v36 = vsel %vm948_vm5, %v4990_v35, 0.0  ;;  %v4992_v37 = vpop.eup %4991 }
 0x4a7   : > { %1250 = vadd.xlane.f32.xlu0 %v1249_v36  ;;  %v1252_v39 = vsel %vm952_vm4, %v4992_v37, 0.0 }
 0x4ab   : > { %1253 = vadd.xlane.f32.xlu0 %v1252_v39 }
 0x4c1   : > { %4927 = vrot.lane.b32.xlu0 %v5370_v33, %s5933_s1  ;;  %s5973_s1 = smov 40  }
 0x534   : > { %v1251_v40 = vpop.xlane.xlu0 %1250 }
 0x535   : > { %4993 = vrcp.f32 %v1251_v40 }
 0x538   : > { %v1254_v41 = vpop.xlane.xlu0 %1253 }
 0x539   : > { %4995 = vrcp.f32 %v1254_v41 }
 0x53c   : > { %v4928_v42 = vpop.permute.xlu0 %4927 }
 0x53d   : > { %v4930_v43 = vunpack.i.h.bf16 %v4928_v42  ;;  %v4929_v44 = vunpack.i.l.bf16 %v4928_v42 }
 0x53f   : > { %v4686_v45 = vpack.c.bf16 %v4930_v43, %v4929_v44  ;;  %v4994_v46 = vpop.eup %4993 }
 0x540   : > { %v1257_v50 = vmul.f32 %v4994_v46, %v4990_v35 }
 0x541   : > { %4688 = vmatprep.subr.msk.bf16.mxu0 %vm5380_vm3, %v4686_v45 }
 0x542   : > { %v4392_v47 = vpop.f32.mrb[6].mxu1  ;;  %4691 = vmatpush3.bf16.xpose.msk.msra.mxu0 %vm5380_vm3, %v4686_v45 }
 0x543   : > { %v1052_v48 = vpop.f32.mrb[7].mxu1  ;;  %v4996_v49 = vpop.eup %4995 }
 0x544   : > { %4395 = vmatprep.mubr.msk.f32.mxu1 %vm862_vm2, %v1052_v48  ;;  %v1258_v54 = vmul.f32 %v4996_v49, %v4992_v37 }
 0x545   : > { %4396 = vmatmul.mubr.msk.f32.vlgmr.msra.gmra.mrb[8].mxu1 %vm862_vm2, %v4392_v47  ;;  %v4423_v51 = vpop.f32.mrb[2].mxu0 }
 0x546   : > { %4673 = vmatpush3.bf16.msk.msra.mxu1 %vm5408_vm8, %v4668_v25  ;;  %v1522_v52 = vmul.f32 0.35355338, %v4423_v51  ;;  %4409 = vmatprep.mubr.msk.f32.mxu1 %vm948_vm5, %v1257_v50  ;;  %v1512_v53 = vpop.f32.mrb[3].mxu0  ;;  %v848_v50 = vld [vmem:[%s5907_s7 + $0x18] sm:$0xff] }
 0x547   : > { %v1521_v55 = vmul.f32 0.35355338, %v1512_v53  ;;  %4412 = vmatprep.subr.mxu1 %v846_v59 }
 0x548   : > { %v1526_v57 = vsel %vm952_vm4, %v1522_v52, -inf }
 0x549   : > { %4410 = vmatmul.mubr.msk.f32.vlgmr.msra.gmra.mrb[10].mxu1 %vm948_vm5, %v1258_v54  ;;  %4441 = vmatmul.mubr.msk.f32.vlgmr.msra.gmra.mrb[4].mxu0 %vm862_vm2, %v1719_v56  ;;  %v1523_v58 = vsel %vm948_vm5, %v1521_v55, -inf  ;;  %v4069_v54 = vld [vmem:[%s5908_s8] ss:$0 sm:$0xff] }
 0x54a   : > { %1527 = vmax.xlane.f32.xlu1 %v1526_v57  ;;  %1524 = vmax.xlane.f32.xlu0 %v1523_v58 }
 0x54b   : > { %4413 = vmatpush3.msra.mxu1 %v846_v59 }
 0x55b   : > { %4932 = vrot.lane.b32.xlu1 %v5370_v33, %s5936_s28  ;;  %s5968_s28 = smov 56  }
 0x55f   : > { %4937 = vrot.lane.b32.xlu1 %v5370_v33, %s5935_s26 }
 0x5d7   : > { %v1528_v60 = vpop.xlane.xlu1 %1527  ;;  %v1525_v61 = vpop.xlane.xlu0 %1524 }
 0x5d8   : > { %v1530_v62 = vsub.f32 %v1522_v52, %v1528_v60  ;;  %v1529_v63 = vsub.f32 %v1521_v55, %v1525_v61 }
 0x5da   : > { %v1531_v1 = vmul.f32 1.442695, %v1529_v63  ;;  %v1533_v2 = vmul.f32 1.442695, %v1530_v62 }
 0x5db   : > { %v4933_v3 = vpop.permute.xlu1 %4932 }
 0x5dc   : > { %v4935_v4 = vunpack.i.h.bf16 %v4933_v3  ;;  %v4934_v5 = vunpack.i.l.bf16 %v4933_v3  ;;  %4997 = vpow2.f32 %v1531_v1 }
 0x5dd   : > { %4999 = vpow2.f32 %v1533_v2 }
 0x5de   : > { %v4680_v6 = vpack.c.bf16 %v4935_v4, %v4934_v5 }
 0x5df   : > { %v4938_v22 = vpop.permute.xlu1 %4937 }
 0x5e0   : > { %4682 = vmatprep.subr.msk.bf16.mxu1 %vm5408_vm8, %v4680_v6  ;;  %v4940_v24 = vunpack.i.h.bf16 %v4938_v22  ;;  %v4939_v25 = vunpack.i.l.bf16 %v4938_v22  ;;  %v4107_v22 = vld [vmem:[%s5914_s14] ss:$0 sm:$0xff] }
 0x5e2   : > { %v4692_v30 = vpack.c.bf16 %v4940_v24, %v4939_v25 }
 0x5e6   : > { %v4998_v7 = vpop.eup %4997 }
 0x5e7   : > { %v1535_v33 = vsel %vm948_vm5, %v4998_v7, 0.0  ;;  %v5000_v8 = vpop.eup %4999 }
 0x5e8   : > { %1536 = vadd.xlane.f32.xlu0 %v1535_v33  ;;  %v1538_v9 = vsel %vm952_vm4, %v5000_v8, 0.0 }
 0x5ec   : > { %1539 = vadd.xlane.f32.xlu0 %v1538_v9 }
 0x61c   : > { %v4411_v10 = vpop.f32.mrb[10].mxu1  ;;  %v4442_v11 = vpop.f32.mrb[4].mxu0 }
 0x61d   : > { %v1338_v12 = vpop.f32.mrb[11].mxu1  ;;  %v1798_v13 = vpop.f32.mrb[5].mxu0  ;;  %v1808_v16 = vmul.f32 0.35355338, %v4442_v11  ;;  %v2053_v11 = vld [vmem:[%s5909_s9 + $0x18] sm:$0xff] }
 0x61e   : > { %v1807_v14 = vmul.f32 0.35355338, %v1798_v13  ;;  %4414 = vmatprep.mubr.msk.f32.mxu1 %vm862_vm2, %v1338_v12 }
 0x61f   : > { %4415 = vmatmul.mubr.msk.f32.vlgmr.msra.gmra.mrb[8].mxu1 %vm862_vm2, %v4411_v10  ;;  %v1812_v18 = vsel %vm952_vm4, %v1808_v16, -inf  ;;  %v2052_v10 = vld [vmem:[%s5909_s9 + $0x10] sm:$0xff] }
 0x620   : > { %4685 = vmatpush3.bf16.msk.msra.mxu1 %vm5408_vm8, %v4680_v6  ;;  %v1809_v17 = vsel %vm948_vm5, %v1807_v14, -inf  ;;  %v4702_v12 = vpack.c.bf16 %v2053_v11, %v2052_v10 }
 0x621   : > { %1810 = vmax.xlane.f32.xlu0 %v1809_v17  ;;  %4431 = vmatprep.subr.mxu1 %v847_v15 }
 0x625   : > { %1813 = vmax.xlane.f32.xlu0 %v1812_v18 }
 0x675   : > { %v1537_v19 = vpop.xlane.xlu0 %1536 }
 0x676   : > { %5001 = vrcp.f32 %v1537_v19 }
 0x679   : > { %v1540_v20 = vpop.xlane.xlu0 %1539 }
 0x67a   : > { %5003 = vrcp.f32 %v1540_v20  ;;  %v4106_v20 = vld [vmem:[%s5913_s13] ss:$0 sm:$0xff] }
 0x680   : > { %v5002_v21 = vpop.eup %5001 }
 0x681   : > { %v1543_v23 = vmul.f32 %v5002_v21, %v4998_v7 }
 0x683   : > { %4428 = vmatprep.mubr.msk.f32.mxu1 %vm948_vm5, %v1543_v23 }
 0x684   : > { %v5004_v28 = vpop.eup %5003 }
 0x685   : > { %v1544_v29 = vmul.f32 %v5004_v28, %v5000_v8  ;;  %v2051_v8 = vld [vmem:[%s5909_s9 + $0x8] sm:$0xff] }
 0x687   : > { %4429 = vmatmul.mubr.msk.f32.vlgmr.msra.gmra.mrb[12].mxu1 %vm948_vm5, %v1544_v29 }
 0x688   : > { %4432 = vmatpush3.msra.mxu1 %v847_v15 }
 0x689   : > { %4694 = vmatprep.subr.msk.bf16.mxu1 %vm5408_vm8, %v4692_v30 }
 0x6ae   : > { %v1811_v31 = vpop.xlane.xlu0 %1810 }
 0x6af   : > { %v1815_v32 = vsub.f32 %v1807_v14, %v1811_v31  ;;  %v2196_v31 = vld [vmem:[%s5911_s11] sm:$0xff] }
 0x6b1   : > { %v1817_v34 = vmul.f32 1.442695, %v1815_v32  ;;  %v2197_v32 = vld [vmem:[%s5911_s11 + $0x8] sm:$0xff] }
 0x6b2   : > { %v1814_v35 = vpop.xlane.xlu0 %1813 }
 0x6b3   : > { %5005 = vpow2.f32 %v1817_v34  ;;  %v1816_v36 = vsub.f32 %v1808_v16, %v1814_v35  ;;  %v4706_v34 = vpack.c.bf16 %v2197_v32, %v2196_v31  ;;  %v2198_v35 = vld [vmem:[%s5911_s11 + $0x10] sm:$0xff] }
 0x6b5   : > { %v1819_v37 = vmul.f32 1.442695, %v1816_v36  ;;  %v2199_v36 = vld [vmem:[%s5911_s11 + $0x18] sm:$0xff] }
 0x6b7   : > { %5007 = vpow2.f32 %v1819_v37  ;;  %v4710_v37 = vpack.c.bf16 %v2199_v36, %v2198_v35 }
 0x6bd   : > { %v5006_v39 = vpop.eup %5005 }
 0x6be   : > { %v1821_v40 = vsel %vm948_vm5, %v5006_v39, 0.0 }
 0x6bf   : > { %1822 = vadd.xlane.f32.xlu0 %v1821_v40  ;;  %v2201_v40 = vld [vmem:[%s5911_s11 + $0x28] sm:$0xff] }
 0x6c1   : > { %v5008_v41 = vpop.eup %5007 }
 0x6c2   : > { %v1824_v42 = vsel %vm952_vm4, %v5008_v41, 0.0 }
 0x6c3   : > { %1825 = vadd.xlane.f32.xlu0 %v1824_v42  ;;  %v2202_v42 = vld [vmem:[%s5911_s11 + $0x30] sm:$0xff] }
 0x74c   : > { %v1823_v43 = vpop.xlane.xlu0 %1822 }
 0x74d   : > { %5009 = vrcp.f32 %v1823_v43  ;;  %v2203_v43 = vld [vmem:[%s5911_s11 + $0x38] sm:$0xff] }
 0x750   : > { %v1826_v44 = vpop.xlane.xlu0 %1825 }
 0x751   : > { %5011 = vrcp.f32 %v1826_v44  ;;  %v4718_v44 = vpack.c.bf16 %v2203_v43, %v2202_v42 }
 0x757   : > { %v5010_v45 = vpop.eup %5009 }
 0x758   : > { %v1829_v49 = vmul.f32 %v5010_v45, %v5006_v39  ;;  %v2200_v39 = vld [vmem:[%s5911_s11 + $0x20] sm:$0xff] }
 0x759   : > { %v2204_v45 = vld [vmem:[%s5911_s11 + $0x40] sm:$0xff] }
 0x75a   : > { %v4430_v46 = vpop.f32.mrb[12].mxu1 }
 0x75b   : > { %v1624_v47 = vpop.f32.mrb[13].mxu1  ;;  %v5012_v48 = vpop.eup %5011 }
 0x75c   : > { %4433 = vmatprep.mubr.msk.f32.mxu1 %vm862_vm2, %v1624_v47  ;;  %v1830_v51 = vmul.f32 %v5012_v48, %v5008_v41  ;;  %v4714_v41 = vpack.c.bf16 %v2201_v40, %v2200_v39  ;;  %v2206_v48 = vld [vmem:[%s5911_s11 + $0x50] sm:$0xff] }
 0x75d   : > { %4434 = vmatmul.mubr.msk.f32.vlgmr.msra.gmra.mrb[8].mxu1 %vm862_vm2, %v4430_v46  ;;  %v2205_v46 = vld [vmem:[%s5911_s11 + $0x48] sm:$0xff] }
 0x75e   : > { %4697 = vmatpush3.bf16.msk.msra.mxu1 %vm5408_vm8, %v4692_v30  ;;  %4447 = vmatprep.mubr.msk.f32.mxu1 %vm948_vm5, %v1829_v49  ;;  %v4722_v47 = vpack.c.bf16 %v2205_v46, %v2204_v45  ;;  %v2207_v49 = vld [vmem:[%s5911_s11 + $0x58] sm:$0xff] }
 0x75f   : > { %4450 = vmatprep.subr.mxu1 %v848_v50 }
 0x761   : > { %4448 = vmatmul.mubr.msk.f32.vlgmr.msra.gmra.mrb[14].mxu1 %vm948_vm5, %v1830_v51  ;;  %v2208_v51 = vld [vmem:[%s5911_s11 + $0x60] sm:$0xff] }
 0x762   : > { %4451 = vmatpush3.msra.mxu1 %v848_v50  ;;  %v4726_v50 = vpack.c.bf16 %v2207_v49, %v2206_v48 }
 0x763   : > { %4707 = vmatprep.subr.bf16.mxu1 %v4706_v34 }
 0x834   : > { %v4449_v52 = vpop.f32.mrb[14].mxu1 }
 0x835   : > { %v1910_v53 = vpop.f32.mrb[15].mxu1 }
 0x836   : > { %4452 = vmatprep.mubr.msk.f32.mxu1 %vm862_vm2, %v1910_v53 }
 0x837   : > { %4453 = vmatmul.mubr.msk.f32.vlgmr.msra.gmra.mrb[8].mxu1 %vm862_vm2, %v4449_v52  ;;  %v2209_v52 = vld [vmem:[%s5911_s11 + $0x68] sm:$0xff] }
 0x838   : > { %4709 = vmatpush3.bf16.msra.mxu1 %v4706_v34  ;;  %v4730_v53 = vpack.c.bf16 %v2209_v52, %v2208_v51  ;;  %v4111_v52 = vld [vmem:[%s5912_s12] ss:$0 sm:$0xff] }
 0x839   : > { %4711 = vmatprep.subr.bf16.mxu1 %v4710_v37 }
 0x83c   : > { %4713 = vmatpush3.bf16.msra.mxu1 %v4710_v37 }
 0x83d   : > { %4715 = vmatprep.subr.bf16.mxu1 %v4714_v41 }
 0x840   : > { %4717 = vmatpush3.bf16.msra.mxu1 %v4714_v41 }
 0x841   : > { %4719 = vmatprep.subr.bf16.mxu1 %v4718_v44 }
 0x844   : > { %4721 = vmatpush3.bf16.msra.mxu1 %v4718_v44 }
 0x845   : > { %4723 = vmatprep.subr.bf16.mxu1 %v4722_v47 }
 0x848   : > { %4725 = vmatpush3.bf16.msra.mxu1 %v4722_v47 }
 0x849   : > { %4727 = vmatprep.subr.bf16.mxu1 %v4726_v50 }
 0x84c   : > { %4729 = vmatpush3.bf16.msra.mxu1 %v4726_v50 }
 0x84d   : > { %4731 = vmatprep.subr.bf16.mxu1 %v4730_v53 }
 0x850   : > { %4733 = vmatpush3.bf16.msra.mxu1 %v4730_v53 }
 0x90a   : > { %v4454_v55 = vpop.f32.mrb[8].mxu1 }
 0x90b   : > { %v4834_v56 = vadd.f32 %v4454_v55, %v4069_v54  ;;  %v1991_v57 = vpop.f32.mrb[9].mxu1  ;;  %v2211_v55 = vld [vmem:[%s5911_s11 + $0x78] sm:$0xff] }
 0x90c   : > { %v4835_v58 = vadd.f32 %v4069_v54, %v1991_v57  ;;  %v2210_v54 = vld [vmem:[%s5911_s11 + $0x70] sm:$0xff]  ;;  %v4108_v57 = vld [vmem:[%s5910_s10] ss:$0 sm:$0xff] }
 0x90d   : > { %v2003_v59 = vadd.f32 %v4834_v56, %v5357_v26  ;;  %v4734_v56 = vpack.c.bf16 %v2211_v55, %v2210_v54 }
 0x90e   : > { %v2002_v60 = vadd.f32 %v4835_v58, %v5359_v27  ;;  %v2050_v27 = vld [vmem:[%s5909_s9] sm:$0xff] }
 0x90f   : > { %v2010_v61 = vsel %vm2009_vm9, %v2003_v59, 0.0  ;;  %v4698_v9 = vpack.c.bf16 %v2051_v8, %v2050_v27  ;;  %4735 = vmatprep.subr.bf16.mxu1 %v4734_v56 }
 0x910   : > { %2011 = vadd.xlane.f32.xlu1 %v2010_v61  ;;  %v2006_v62 = vsel %vm653_vm0, %v2002_v60, 0.0  ;;  %4737 = vmatpush3.bf16.msra.mxu1 %v4734_v56 }
 0x911   : > { %2007 = vadd.xlane.f32.xlu0 %v2006_v62  ;;  %4699 = vmatprep.subr.bf16.mxu0 %v4698_v9 }
 0x912   : > { %4701 = vmatpush3.bf16.msra.mxu0 %v4698_v9 }
 0x913   : > { %4703 = vmatprep.subr.bf16.mxu0 %v4702_v12 }
 0x916   : > { %4705 = vmatpush3.bf16.msra.mxu0 %v4702_v12 }
 0x99d   : > { %v2012_v63 = vpop.xlane.xlu1 %2011 }
 0x99e   : > { %v2015_v1 = vmul.f32 0.03125, %v2012_v63  ;;  %v2008_v2 = vpop.xlane.xlu0 %2007 }
 0x99f   : > { %v2014_v3 = vmul.f32 0.03125, %v2008_v2 }
 0x9a0   : > { %v2017_v4 = vsub.f32 %v2003_v59, %v2015_v1 }
 0x9a1   : > { %v2016_v5 = vsub.f32 %v2002_v60, %v2014_v3 }
 0x9a2   : > { %v2019_v33 = vmul.f32 %v2017_v4, %v2017_v4 }
 0x9a3   : > { %v2018_v6 = vmul.f32 %v2016_v5, %v2016_v5 }
 0x9a4   : > { %v2023_v26 = vsel %vm2009_vm9, %v2019_v33, 0.0 }
 0x9a5   : > { %v2020_v7 = vsel %vm653_vm0, %v2018_v6, 0.0 }
 0x9a6   : > { %2021 = vadd.xlane.f32.xlu0 %v2020_v7 }
 0x9aa   : > { %2024 = vadd.xlane.f32.xlu0 %v2023_v26 }
 0xa33   : > { %v2022_v13 = vpop.xlane.xlu0 %2021 }
 0xa34   : > { %v2026_v14 = vmul.f32 0.03125, %v2022_v13 }
 0xa36   : > { %v2028_v15 = vadd.f32 1e-05, %v2026_v14 }
 0xa37   : > { %v2025_v16 = vpop.xlane.xlu0 %2024 }
 0xa38   : > { %5013 = vrsqrt.f32 %v2028_v15  ;;  %v2027_v17 = vmul.f32 0.03125, %v2025_v16 }
 0xa3a   : > { %v2029_v18 = vadd.f32 1e-05, %v2027_v17 }
 0xa3c   : > { %5015 = vrsqrt.f32 %v2029_v18 }
 0xa42   : > { %v5014_v19 = vpop.eup %5013 }
 0xa43   : > { %v2032_v21 = vmul.f32 %v5014_v19, %v2016_v5 }
 0xa45   : > { %v2040_v23 = vmul.f32 %v4106_v20, %v2032_v21 }
 0xa46   : > { %v5016_v24 = vpop.eup %5015 }
 0xa47   : > { %v2033_v25 = vmul.f32 %v5016_v24, %v2017_v4  ;;  %v5517_v28 = vadd.f32 %v4107_v22, %v2040_v23 }
 0xa49   : > { %v2041_v29 = vmul.f32 %v4106_v20, %v2033_v25  ;;  %4463 = vmatprep.mubr.msk.f32.mxu0 %vm653_vm0, %v5517_v28 }
 0xa4b   : > { %v5521_v30 = vadd.f32 %v4107_v22, %v2041_v29 }
 0xa4d   : > { %4464 = vmatmul.mubr.msk.f32.vlgmr.msra.gmra.mrb[6].mxu0 %vm653_vm0, %v5521_v30 }
 0xb20   : > { %v4465_v58 = vpop.f32.mrb[6].mxu0 }
 0xb21   : > { %v2139_v59 = vadd.f32 %v4465_v58, %v4108_v57  ;;  %v2133_v60 = vpop.f32.mrb[7].mxu0 }
 0xb22   : > { %v2134_v61 = vadd.f32 %v4108_v57, %v2133_v60 }
 0xb23   : > { %v2145_v62 = vmul.f32 0.70710677, %v2139_v59  ;;  %v2143_v49 = vmul.f32 0.5, %v2139_v59 }
 0xb24   : > { %v2144_v63 = vmul.f32 0.70710677, %v2134_v61  ;;  %v2142_v47 = vmul.f32 0.5, %v2134_v61 }
 0xb25   : > { %v2147_v1 = vand.u32 2147483647, %v2145_v62  ;;  %vm2187_vm10 = vcmp.lt.f32.partialorder %v2145_v62, 0.0 }
 0xb26   : > { %v2146_v2 = vand.u32 2147483647, %v2144_v63  ;;  %vm2186_vm11 = vcmp.lt.f32.partialorder %v2144_v63, 0.0 }
 0xb27   : > { %v2149_v3 = vmul.f32 0.3275911, %v2147_v1  ;;  %v2175_v7 = vsub.f32 0.0, %v2147_v1 }
 0xb28   : > { %v2148_v4 = vmul.f32 0.3275911, %v2146_v2  ;;  %v2174_v33 = vsub.f32 0.0, %v2146_v2 }
 0xb29   : > { %v2151_v5 = vadd.f32 1.0, %v2149_v3  ;;  %v2177_v27 = vmul.f32 %v2175_v7, %v2147_v1  ;;  %v4115_v7 = vld [vmem:[%s5905_s5 + $0x28] sm:$0xff] }
 0xb2a   : > { %v2150_v6 = vadd.f32 1.0, %v2148_v4  ;;  %v2176_v10 = vmul.f32 %v2174_v33, %v2146_v2 }
 0xb2b   : > { %5017 = vrcp.f32 %v2151_v5  ;;  %v2180_v13 = vmul.f32 1.442695, %v2177_v27  ;;  %v4117_v27 = vld [vmem:[%s5905_s5 + $0x38] sm:$0xff] }
 0xb2c   : > { %5019 = vrcp.f32 %v2150_v6  ;;  %v2178_v16 = vmul.f32 1.442695, %v2176_v10 }
 0xb2d   : > { %5021 = vpow2.f32 %v2180_v13 }
 0xb2e   : > { %5023 = vpow2.f32 %v2178_v16  ;;  %v4112_v16 = vld [vmem:[%s5915_s15] ss:$0 sm:$0xff] }
 0xb35   : > { %v5018_v26 = vpop.eup %5017 }
 0xb36   : > { %v5020_v8 = vpop.eup %5019  ;;  %v2157_v9 = vmul.f32 1.0614054, %v5018_v26 }
 0xb37   : > { %v2156_v11 = vmul.f32 1.0614054, %v5020_v8  ;;  %v5022_v34 = vpop.eup %5021 }
 0xb38   : > { %v2159_v12 = vadd.f32 -1.4531521, %v2157_v9  ;;  %v5024_v36 = vpop.eup %5023 }
 0xb39   : > { %v2158_v14 = vadd.f32 -1.4531521, %v2156_v11 }
 0xb3a   : > { %v2161_v15 = vmul.f32 %v5018_v26, %v2159_v12 }
 0xb3b   : > { %v2160_v17 = vmul.f32 %v5020_v8, %v2158_v14 }
 0xb3c   : > { %v2163_v18 = vadd.f32 1.4214138, %v2161_v15 }
 0xb3d   : > { %v2162_v19 = vadd.f32 1.4214138, %v2160_v17 }
 0xb3e   : > { %v2165_v20 = vmul.f32 %v5018_v26, %v2163_v18  ;;  %v4113_v18 = vld [vmem:[%s5916_s16] ss:$0 sm:$0xff] }
 0xb3f   : > { %v2164_v21 = vmul.f32 %v5020_v8, %v2162_v19 }
 0xb40   : > { %v2167_v22 = vadd.f32 -0.28449672, %v2165_v20 }
 0xb41   : > { %v2166_v23 = vadd.f32 -0.28449672, %v2164_v21 }
 0xb42   : > { %v2169_v24 = vmul.f32 %v5018_v26, %v2167_v22 }
 0xb43   : > { %v2168_v25 = vmul.f32 %v5020_v8, %v2166_v23 }
 0xb44   : > { %v2171_v29 = vadd.f32 0.2548296, %v2169_v24 }
 0xb45   : > { %v2170_v31 = vadd.f32 0.2548296, %v2168_v25  ;;  %v4119_v25 = vld [vmem:[%s5906_s6 + $0x1] ss:$0 sm:$0xff] }
 0xb46   : > { %v2173_v32 = vmul.f32 %v5018_v26, %v2171_v29  ;;  %v4116_v26 = vld [vmem:[%s5905_s5 + $0x30] sm:$0xff] }
 0xb47   : > { %v2172_v35 = vmul.f32 %v5020_v8, %v2170_v31  ;;  %v4742_v8 = vpack.c.bf16 %v4117_v27, %v4116_v26 }
 0xb48   : > { %v2183_v37 = vmul.f32 %v5022_v34, %v2173_v32 }
 0xb49   : > { %v2182_v39 = vmul.f32 %v5024_v36, %v2172_v35 }
 0xb4a   : > { %v2185_v40 = vsub.f32 1.0, %v2183_v37 }
 0xb4b   : > { %v2184_v41 = vsub.f32 1.0, %v2182_v39 }
 0xb4c   : > { %v2189_v42 = vsub.f32 0.0, %v2185_v40 }
 0xb4d   : > { %v2188_v43 = vsub.f32 0.0, %v2184_v41 }
 0xb4e   : > { %v2191_v44 = vsel %vm2187_vm10, %v2189_v42, %v2185_v40 }
 0xb4f   : > { %v2193_v45 = vadd.f32 1.0, %v2191_v44  ;;  %v2190_v46 = vsel %vm2186_vm11, %v2188_v43, %v2184_v41 }
 0xb50   : > { %v2192_v48 = vadd.f32 1.0, %v2190_v46 }
 0xb51   : > { %v2195_v51 = vmul.f32 %v2193_v45, %v2143_v49 }
 0xb52   : > { %v2194_v50 = vmul.f32 %v2192_v48, %v2142_v47 }
 0xb54   : > { %4498 = vmatprep.mubr.f32.mxu1 %v2194_v50 }
 0xb55   : > { %4499 = vmatmul.mubr.f32.vlgmr.msra.gmra.mrb[16].mxu1 %v2195_v51 }
 0xc28   : > { %v4500_v53 = vpop.f32.mrb[16].mxu1 }
 0xc29   : > { %v2285_v54 = vpop.f32.mrb[17].mxu1  ;;  %v2291_v55 = vadd.f32 %v4500_v53, %v4111_v52 }
 0xc2a   : > { %v2286_v56 = vadd.f32 %v4111_v52, %v2285_v54 }
 0xc2b   : > { %v2295_v60 = vadd.f32 %v2291_v55, %v5521_v30  ;;  %v4114_v30 = vld [vmem:[%s5905_s5 + $0x20] sm:$0xff] }
 0xc2c   : > { %v2294_v57 = vadd.f32 %v2286_v56, %v5517_v28  ;;  %v4738_v33 = vpack.c.bf16 %v4115_v7, %v4114_v30 }
 0xc2d   : > { %v2301_v59 = vsel %vm2009_vm9, %v2295_v60, 0.0 }
 0xc2e   : > { %v2298_v58 = vsel %vm653_vm0, %v2294_v57, 0.0  ;;  %4739 = vmatprep.subr.bf16.mxu0 %v4738_v33 }
 0xc2f   : > { %2299 = vadd.xlane.f32.xlu0 %v2298_v58  ;;  %4741 = vmatpush3.bf16.msra.mxu0 %v4738_v33 }
 0xc30   : > { %4743 = vmatprep.subr.bf16.mxu0 %v4742_v8 }
 0xc33   : > { %2302 = vadd.xlane.f32.xlu0 %v2301_v59  ;;  %4745 = vmatpush3.bf16.msra.mxu0 %v4742_v8 }
 0xcbc   : > { %v2300_v61 = vpop.xlane.xlu0 %2299 }
 0xcbd   : > { %v2304_v62 = vmul.f32 0.03125, %v2300_v61 }
 0xcbf   : > { %v2306_v63 = vsub.f32 %v2294_v57, %v2304_v62 }
 0xcc0   : > { %v2303_v1 = vpop.xlane.xlu0 %2302 }
 0xcc1   : > { %v2305_v2 = vmul.f32 0.03125, %v2303_v1  ;;  %v2308_v3 = vmul.f32 %v2306_v63, %v2306_v63 }
 0xcc3   : > { %v2307_v4 = vsub.f32 %v2295_v60, %v2305_v2  ;;  %v2310_v5 = vsel %vm653_vm0, %v2308_v3, 0.0 }
 0xcc4   : > { %2311 = vadd.xlane.f32.xlu0 %v2310_v5 }
 0xcc5   : > { %v2309_v6 = vmul.f32 %v2307_v4, %v2307_v4 }
 0xcc7   : > { %v2313_v28 = vsel %vm2009_vm9, %v2309_v6, 0.0 }
 0xcc8   : > { %2314 = vadd.xlane.f32.xlu0 %v2313_v28 }
 0xd51   : > { %v2312_v9 = vpop.xlane.xlu0 %2311 }
 0xd52   : > { %v2316_v10 = vmul.f32 0.03125, %v2312_v9 }
 0xd54   : > { %v2318_v11 = vadd.f32 1e-05, %v2316_v10 }
 0xd55   : > { %v2315_v12 = vpop.xlane.xlu0 %2314 }
 0xd56   : > { %5025 = vrsqrt.f32 %v2318_v11  ;;  %v2317_v13 = vmul.f32 0.03125, %v2315_v12 }
 0xd58   : > { %v2319_v14 = vadd.f32 1e-05, %v2317_v13 }
 0xd5a   : > { %5027 = vrsqrt.f32 %v2319_v14 }
 0xd60   : > { %v5026_v15 = vpop.eup %5025 }
 0xd61   : > { %v2322_v17 = vmul.f32 %v5026_v15, %v2306_v63  ;;  %v4122_v63 = vld [vmem:[%s5907_s7 + $0x20] sm:$0xff] }
 0xd63   : > { %v2330_v19 = vmul.f32 %v4112_v16, %v2322_v17 }
 0xd64   : > { %v5028_v20 = vpop.eup %5027 }
 0xd65   : > { %v2323_v21 = vmul.f32 %v5028_v20, %v2307_v4  ;;  %v5603_v22 = vadd.f32 %v4113_v18, %v2330_v19 }
 0xd67   : > { %v2331_v23 = vmul.f32 %v4112_v16, %v2323_v21  ;;  %4509 = vmatprep.mubr.msk.f32.mxu0 %vm653_vm0, %v5603_v22 }
 0xd69   : > { %v5607_v24 = vadd.f32 %v4113_v18, %v2331_v23 }
 0xd6b   : > { %4510 = vmatmul.mubr.msk.f32.vlgmr.msra.gmra.mrb[8].mxu0 %vm653_vm0, %v5607_v24 }
 0xe3e   : > { %v4511_v29 = vpop.f32.mrb[8].mxu0 }
 0xe3f   : > { %v5614_v31 = vadd.f32 %v4511_v29, %v4119_v25  ;;  %v2425_v32 = vpop.f32.mrb[9].mxu0 }
 0xe40   : > { %v5616_v34 = vadd.f32 %v4119_v25, %v2425_v32 }
 0xe42   : > { %4516 = vmatprep.mubr.msk.f32.mxu0 %vm862_vm2, %v5616_v34  ;;  %v5622_v35 = vpack.i.bf16 %v5614_v31, %v5616_v34 }
 0xe44   : > { %4942 = vrot.lane.b32.xlu0 %v5622_v35, %s5144_s23  ;;  %s5965_s23 = smov 88  }
 0xeb6   : > { %v4943_v36 = vpop.permute.xlu0 %4942 }
 0xeb7   : > { %v4945_v37 = vunpack.i.h.bf16 %v4943_v36  ;;  %v4944_v39 = vunpack.i.l.bf16 %v4943_v36 }
 0xeb9   : > { %v4746_v40 = vpack.c.bf16 %v4945_v37, %v4944_v39 }
 0xebb   : > { %4748 = vmatprep.subr.msk.bf16.mxu0 %vm5380_vm3, %v4746_v40 }
 0xebc   : > { %4751 = vmatpush3.bf16.xpose.msk.msra.mxu0 %vm5380_vm3, %v4746_v40 }
 0xec3   : > { %4517 = vmatmul.mubr.msk.f32.vlgmr.msra.gmra.mrb[10].mxu0 %vm862_vm2, %v5614_v31 }
 0xf96   : > { %v4518_v41 = vpop.f32.mrb[10].mxu0 }
 0xf97   : > { %v2527_v42 = vpop.f32.mrb[11].mxu0  ;;  %v2537_v44 = vmul.f32 0.35355338, %v4518_v41 }
 0xf98   : > { %v2536_v43 = vmul.f32 0.35355338, %v2527_v42 }
 0xf99   : > { %v2541_v46 = vsel %vm952_vm4, %v2537_v44, -inf }
 0xf9a   : > { %v2538_v45 = vsel %vm948_vm5, %v2536_v43, -inf }
 0xf9b   : > { %2539 = vmax.xlane.f32.xlu1 %v2538_v45 }
 0xf9f   : > { %2542 = vmax.xlane.f32.xlu1 %v2541_v46 }
0x1028   : > { %v2540_v47 = vpop.xlane.xlu1 %2539 }
0x1029   : > { %v2544_v48 = vsub.f32 %v2536_v43, %v2540_v47 }
0x102b   : > { %v2546_v49 = vmul.f32 1.442695, %v2544_v48 }
0x102c   : > { %v2543_v50 = vpop.xlane.xlu1 %2542 }
0x102d   : > { %5029 = vpow2.f32 %v2546_v49  ;;  %v2545_v51 = vsub.f32 %v2537_v44, %v2543_v50 }
0x102f   : > { %v2548_v52 = vmul.f32 1.442695, %v2545_v51 }
0x1031   : > { %5031 = vpow2.f32 %v2548_v52 }
0x1037   : > { %v5030_v53 = vpop.eup %5029 }
0x1038   : > { %v2550_v54 = vsel %vm948_vm5, %v5030_v53, 0.0 }
0x1039   : > { %2551 = vadd.xlane.f32.xlu1 %v2550_v54 }
0x103b   : > { %v5032_v55 = vpop.eup %5031 }
0x103c   : > { %v2553_v56 = vsel %vm952_vm4, %v5032_v55, 0.0 }
0x103d   : > { %2554 = vadd.xlane.f32.xlu0 %v2553_v56 }
0x104a   : > { %4947 = vrot.lane.b32.xlu1 %v5622_v35, %s5146_s3  ;;  %s5967_s3 = smov 112  }
0x104e   : > { %4952 = vrot.lane.b32.xlu1 %v5622_v35, %s5965_s23 }
0x1052   : > { %2731 = vrot.lane.b32.xlu1 %v5616_v34, %s5966_s0 }
0x1056   : > { %2733 = vrot.lane.b32.xlu1 %v5614_v31, %s5966_s0  ;;  %s5972_s0 = smov 48  }
0x10c6   : > { %v2552_v57 = vpop.xlane.xlu1 %2551 }
0x10c7   : > { %5033 = vrcp.f32 %v2552_v57 }
0x10ca   : > { %v2555_v58 = vpop.xlane.xlu0 %2554  ;;  %v4948_v60 = vpop.permute.xlu1 %4947 }
0x10cb   : > { %5035 = vrcp.f32 %v2555_v58  ;;  %v4950_v59 = vunpack.i.h.bf16 %v4948_v60  ;;  %v4949_v61 = vunpack.i.l.bf16 %v4948_v60 }
0x10cd   : > { %v4752_v62 = vpack.c.bf16 %v4950_v59, %v4949_v61 }
0x10ce   : > { %v4953_v2 = vpop.permute.xlu1 %4952 }
0x10cf   : > { %4754 = vmatprep.subr.msk.bf16.mxu0 %vm5408_vm8, %v4752_v62  ;;  %v4955_v4 = vunpack.i.h.bf16 %v4953_v2  ;;  %v4954_v5 = vunpack.i.l.bf16 %v4953_v2 }
0x10d0   : > { %4757 = vmatpush3.bf16.msk.msra.mxu0 %vm5408_vm8, %v4752_v62 }
0x10d1   : > { %v5034_v1 = vpop.eup %5033  ;;  %4526 = vmatprep.subr.mxu0 %v4122_v63  ;;  %v4758_v30 = vpack.c.bf16 %v4955_v4, %v4954_v5 }
0x10d2   : > { %v2558_v3 = vmul.f32 %v5034_v1, %v5030_v53  ;;  %v2732_v26 = vpop.permute.xlu1 %2731 }
0x10d4   : > { %4523 = vmatprep.mubr.msk.f32.mxu0 %vm948_vm5, %v2558_v3 }
0x10d5   : > { %v5036_v6 = vpop.eup %5035 }
0x10d6   : > { %v2559_v28 = vmul.f32 %v5036_v6, %v5032_v55  ;;  %v2734_v27 = vpop.permute.xlu1 %2733  ;;  %v4123_v55 = vld [vmem:[%s5907_s7 + $0x28] sm:$0xff] }
0x10d8   : > { %4524 = vmatmul.mubr.msk.f32.vlgmr.msra.gmra.mrb[12].mxu0 %vm948_vm5, %v2559_v28 }
0x10d9   : > { %4527 = vmatpush3.msra.mxu0 %v4122_v63 }
0x10da   : > { %4760 = vmatprep.subr.msk.bf16.mxu0 %vm5380_vm3, %v4758_v30 }
0x11ab   : > { %v4525_v7 = vpop.f32.mrb[12].mxu0 }
0x11ac   : > { %v2639_v33 = vpop.f32.mrb[13].mxu0 }
0x11ad   : > { %4528 = vmatprep.mubr.msk.f32.mxu0 %vm862_vm2, %v2639_v33 }
0x11ae   : > { %4529 = vmatmul.mubr.msk.f32.vlgmr.msra.gmra.mrb[14].mxu0 %vm862_vm2, %v4525_v7 }
0x11af   : > { %4763 = vmatpush3.bf16.xpose.msk.msra.mxu0 %vm5380_vm3, %v4758_v30  ;;  %4535 = vmatprep.mubr.msk.f32.mxu0 %vm862_vm2, %v2732_v26 }
0x11b0   : > { %4545 = vmatprep.subr.mxu0 %v4123_v55 }
0x11b6   : > { %4536 = vmatmul.mubr.msk.f32.vlgmr.msra.gmra.mrb[16].mxu0 %vm862_vm2, %v2734_v27 }
0x11b7   : > { %4546 = vmatpush3.msra.mxu0 %v4123_v55  ;;  %v4127_v55 = vld [vmem:[%s5908_s8 + $0x1] ss:$0 sm:$0xff] }
0x1289   : > { %v4537_v8 = vpop.f32.mrb[16].mxu0 }
0x128a   : > { %v2823_v9 = vmul.f32 0.35355338, %v4537_v8  ;;  %v2813_v10 = vpop.f32.mrb[17].mxu0 }
0x128b   : > { %v2822_v11 = vmul.f32 0.35355338, %v2813_v10 }
0x128c   : > { %v2827_v12 = vsel %vm952_vm4, %v2823_v9, -inf }
0x128d   : > { %2828 = vmax.xlane.f32.xlu0 %v2827_v12  ;;  %v2824_v13 = vsel %vm948_vm5, %v2822_v11, -inf }
0x128e   : > { %2825 = vmax.xlane.f32.xlu1 %v2824_v13 }
0x129f   : > { %3017 = vrot.lane.b32.xlu1 %v5616_v34, %s5967_s3 }
0x12a3   : > { %4957 = vrot.lane.b32.xlu0 %v5622_v35, %s5968_s28 }
0x131a   : > { %v2829_v14 = vpop.xlane.xlu0 %2828 }
0x131b   : > { %v2831_v15 = vsub.f32 %v2823_v9, %v2829_v14  ;;  %v2826_v16 = vpop.xlane.xlu1 %2825 }
0x131c   : > { %v2830_v17 = vsub.f32 %v2822_v11, %v2826_v16 }
0x131d   : > { %v2834_v18 = vmul.f32 1.442695, %v2831_v15 }
0x131e   : > { %v2832_v19 = vmul.f32 1.442695, %v2830_v17  ;;  %v4958_v20 = vpop.permute.xlu0 %4957 }
0x131f   : > { %5037 = vpow2.f32 %v2834_v18  ;;  %v4960_v21 = vunpack.i.h.bf16 %v4958_v20  ;;  %v4959_v23 = vunpack.i.l.bf16 %v4958_v20 }
0x1320   : > { %5039 = vpow2.f32 %v2832_v19 }
0x1321   : > { %v4764_v25 = vpack.c.bf16 %v4960_v21, %v4959_v23 }
0x1323   : > { %4766 = vmatprep.subr.msk.bf16.mxu1 %vm5408_vm8, %v4764_v25 }
0x1324   : > { %4769 = vmatpush3.bf16.msk.msra.mxu1 %vm5408_vm8, %v4764_v25 }
0x1329   : > { %v5038_v29 = vpop.eup %5037 }
0x132a   : > { %v2839_v32 = vsel %vm952_vm4, %v5038_v29, 0.0  ;;  %v5040_v36 = vpop.eup %5039 }
0x132b   : > { %2840 = vadd.xlane.f32.xlu0 %v2839_v32  ;;  %v2836_v37 = vsel %vm948_vm5, %v5040_v36, 0.0 }
0x132f   : > { %2837 = vadd.xlane.f32.xlu0 %v2836_v37 }
0x1345   : > { %4962 = vrot.lane.b32.xlu0 %v5622_v35, %s5969_s27 }
0x1349   : > { %3019 = vrot.lane.b32.xlu0 %v5614_v31, %s5967_s3 }
0x134d   : > { %4967 = vrot.lane.b32.xlu0 %v5622_v35, %s5970_s24  ;;  %s5083_s24 = sshll.u32 %s5155_s2, 4  ;;  %s5084_s24 = int_to_ptr.vmem [resolvable:$false] %s5083_s24 }
0x1351   : > { %3303 = vrot.lane.b32.xlu0 %v5616_v34, %s5971_s21 }
0x1355   : > { %3305 = vrot.lane.b32.xlu0 %v5614_v31, %s5971_s21  ;;  %v3018_v31 = vpop.permute.xlu1 %3017  ;;  %s5085_s21 = scalar_lea.vmem %s5084_s24, 32 }
0x13b8   : > { %v2841_v39 = vpop.xlane.xlu0 %2840 }
0x13b9   : > { %5041 = vrcp.f32 %v2841_v39 }
0x13bc   : > { %v2838_v40 = vpop.xlane.xlu0 %2837 }
0x13bd   : > { %5043 = vrcp.f32 %v2838_v40 }
0x13c0   : > { %v4963_v41 = vpop.permute.xlu0 %4962 }
0x13c1   : > { %v4965_v42 = vunpack.i.h.bf16 %v4963_v41  ;;  %v4964_v43 = vunpack.i.l.bf16 %v4963_v41 }
0x13c3   : > { %v4770_v44 = vpack.c.bf16 %v4965_v42, %v4964_v43  ;;  %v5042_v46 = vpop.eup %5041  ;;  %v4124_v42 = vld [vmem:[%s5907_s7 + $0x30] sm:$0xff] }
0x13c4   : > { %v3020_v45 = vpop.permute.xlu0 %3019  ;;  %v2845_v34 = vmul.f32 %v5042_v46, %v5038_v29 }
0x13c5   : > { %4772 = vmatprep.subr.msk.bf16.mxu1 %vm5380_vm3, %v4770_v44 }
0x13c7   : > { %v5044_v47 = vpop.eup %5043 }
0x13c8   : > { %v4968_v48 = vpop.permute.xlu0 %4967  ;;  %v2844_v49 = vmul.f32 %v5044_v47, %v5040_v36 }
0x13c9   : > { %v4970_v50 = vunpack.i.h.bf16 %v4968_v48  ;;  %v4969_v51 = vunpack.i.l.bf16 %v4968_v48 }
0x13ca   : > { %4542 = vmatprep.mubr.msk.f32.mxu1 %vm948_vm5, %v2844_v49 }
0x13cb   : > { %v4782_v52 = vpack.c.bf16 %v4970_v50, %v4969_v51  ;;  %4543 = vmatmul.mubr.msk.f32.vlgmr.msra.gmra.mrb[18].mxu1 %vm948_vm5, %v2845_v34 }
0x13cc   : > { %4775 = vmatpush3.bf16.xpose.msk.msra.mxu1 %vm5380_vm3, %v4770_v44  ;;  %4554 = vmatprep.mubr.msk.f32.mxu1 %vm862_vm2, %v3018_v31  ;;  %v3304_v53 = vpop.permute.xlu0 %3303  ;;  %v4125_v31 = vld [vmem:[%s5907_s7 + $0x38] sm:$0xff] }
0x13cd   : > { %4784 = vmatprep.subr.msk.bf16.mxu1 %vm5380_vm3, %v4782_v52 }
0x13d0   : > { %v3306_v54 = vpop.permute.xlu0 %3305 }
0x13d3   : > { %4555 = vmatmul.mubr.msk.f32.vlgmr.msra.gmra.mrb[20].mxu1 %vm862_vm2, %v3020_v45 }
0x13d4   : > { %4787 = vmatpush3.bf16.xpose.msk.msra.mxu1 %vm5380_vm3, %v4782_v52  ;;  %4573 = vmatprep.mubr.msk.f32.mxu1 %vm862_vm2, %v3304_v53 }
0x13db   : > { %4574 = vmatmul.mubr.msk.f32.vlgmr.msra.gmra.mrb[22].mxu1 %vm862_vm2, %v3306_v54 }
0x149e   : > { %v4544_v56 = vpop.f32.mrb[18].mxu1 }
0x149f   : > { %v2925_v57 = vpop.f32.mrb[19].mxu1 }
0x14a0   : > { %4547 = vmatprep.mubr.msk.f32.mxu0 %vm862_vm2, %v2925_v57 }
0x14a1   : > { %4548 = vmatmul.mubr.msk.f32.vlgmr.msra.gmra.mrb[14].mxu0 %vm862_vm2, %v4544_v56 }
0x14a6   : > { %v4556_v58 = vpop.f32.mrb[20].mxu1 }
0x14a7   : > { %v3109_v38 = vmul.f32 0.35355338, %v4556_v58  ;;  %v3099_v60 = vpop.f32.mrb[21].mxu1 }
0x14a8   : > { %v3108_v59 = vmul.f32 0.35355338, %v3099_v60 }
0x14a9   : > { %v3113_v61 = vsel %vm952_vm4, %v3109_v38, -inf }
0x14aa   : > { %3114 = vmax.xlane.f32.xlu0 %v3113_v61  ;;  %v3110_v62 = vsel %vm948_vm5, %v3108_v59, -inf }
0x14ab   : > { %3111 = vmax.xlane.f32.xlu1 %v3110_v62 }
0x14ae   : > { %v4575_v63 = vpop.f32.mrb[22].mxu1 }
0x14af   : > { %v3385_v1 = vpop.f32.mrb[23].mxu1  ;;  %v3395_v8 = vmul.f32 0.35355338, %v4575_v63 }
0x14b0   : > { %v3394_v33 = vmul.f32 0.35355338, %v3385_v1 }
0x14b1   : > { %v3399_v10 = vsel %vm952_vm4, %v3395_v8, -inf }
0x14b2   : > { %v3396_v9 = vsel %vm948_vm5, %v3394_v33, -inf }
0x1537   : > { %v3115_v2 = vpop.xlane.xlu0 %3114 }
0x1538   : > { %v3117_v3 = vsub.f32 %v3109_v38, %v3115_v2  ;;  %v3112_v4 = vpop.xlane.xlu1 %3111 }
0x1539   : > { %v3116_v5 = vsub.f32 %v3108_v59, %v3112_v4 }
0x153a   : > { %v3120_v6 = vmul.f32 1.442695, %v3117_v3 }
0x153b   : > { %v3118_v28 = vmul.f32 1.442695, %v3116_v5 }
0x153c   : > { %5045 = vpow2.f32 %v3120_v6 }
0x153d   : > { %5047 = vpow2.f32 %v3118_v28 }
0x1546   : > { %v5046_v30 = vpop.eup %5045 }
0x1547   : > { %v5048_v7 = vpop.eup %5047  ;;  %v3125_v26 = vsel %vm952_vm4, %v5046_v30, 0.0 }
0x1548   : > { %3126 = vadd.xlane.f32.xlu1 %v3125_v26  ;;  %v3122_v27 = vsel %vm948_vm5, %v5048_v7, 0.0  ;;  %v4171_v26 = vld [vmem:[%s5909_s9 + $0x38] sm:$0xff] }
0x1549   : > { %3123 = vadd.xlane.f32.xlu0 %v3122_v27 }
0x154c   : > { %3397 = vmax.xlane.f32.xlu1 %v3396_v9 }
0x1550   : > { %3400 = vmax.xlane.f32.xlu1 %v3399_v10 }
0x155f   : > { %4972 = vrot.lane.b32.xlu0 %v5622_v35, %s5972_s0  ;;  %s5974_s0 = sshll.u32 %s5323_s29, 4  ;;  %s628_s29 = sand.u32 1, %s5133_s22  }
0x1560   : > { %s639_s3 = scalar_lea.vmem %s5919_s19, %s5974_s0  ;;  %s629_s23 = scalar_lea.vmem [#allocation2], %s628_s29 }
0x1561   : > { %s3974_s0 = sshll.u32 %s629_s23, 4  ;;  %s3959_s28 = scalar_lea.sflag [#allocation3], %s628_s29  ;;  %s5859_s0 = int_to_ptr.vmem [resolvable:$true] %s3974_s0 }
0x1562   : > { %s5079_s27 = scalar_lea.vmem %s5859_s0, 16  ;;  %p5086_p0 = scmp.lt.s32.totalorder %s5859_s0, %s5084_s24 }
0x1563   : > { %p5080_p11 = scmp.ne.s32.totalorder %s5859_s0, %s5079_s27  ;;  %p5087_p1 = scmp.lt.s32.totalorder %s5085_s21, %s5079_s27 }
0x1565   : > { %p5081_p12 = pnand %p5080_p11, %p5299_p5  ;;  %p5088_p2 = por %p5087_p1, %p5086_p0 }
0x1567   : > { %p5082_p13 = pneg %p5081_p12 }
0x1569   : > { %p5089_p3 = pnand %p5088_p2, %p5082_p13 }
0x15d5   : > { %v3127_v11 = vpop.xlane.xlu1 %3126 }
0x15d6   : > { %5049 = vrcp.f32 %v3127_v11  ;;  %v3124_v12 = vpop.xlane.xlu0 %3123 }
0x15d7   : > { %5051 = vrcp.f32 %v3124_v12 }
0x15d9   : > { %v3398_v13 = vpop.xlane.xlu1 %3397 }
0x15da   : > { %v4973_v14 = vpop.permute.xlu0 %4972  ;;  %v3402_v17 = vsub.f32 %v3394_v33, %v3398_v13  ;;  %v4170_v33 = vld [vmem:[%s5909_s9 + $0x30] sm:$0xff] }
0x15db   : > { %v4975_v15 = vunpack.i.h.bf16 %v4973_v14  ;;  %v4974_v16 = vunpack.i.l.bf16 %v4973_v14  ;;  %v4798_v27 = vpack.c.bf16 %v4171_v26, %v4170_v33 }
0x15dc   : > { %v3404_v23 = vmul.f32 1.442695, %v3402_v17  ;;  %v4167_v17 = vld [vmem:[%s5914_s14 + $0x1] ss:$0 sm:$0xff] }
0x15dd   : > { %v4776_v18 = vpack.c.bf16 %v4975_v15, %v4974_v16  ;;  %v3401_v19 = vpop.xlane.xlu1 %3400  ;;  %v4166_v15 = vld [vmem:[%s5913_s13 + $0x1] ss:$0 sm:$0xff] }
0x15de   : > { %v3403_v20 = vsub.f32 %v3395_v8, %v3401_v19 }
0x15df   : > { %4778 = vmatprep.subr.msk.bf16.mxu0 %vm5408_vm8, %v4776_v18 }
0x15e0   : > { %v5050_v21 = vpop.eup %5049  ;;  %v3406_v25 = vmul.f32 1.442695, %v3403_v20  ;;  %4781 = vmatpush3.bf16.msk.msra.mxu0 %vm5408_vm8, %v4776_v18 }
0x15e1   : > { %v5052_v29 = vpop.eup %5051  ;;  %v3131_v36 = vmul.f32 %v5050_v21, %v5046_v30  ;;  %4564 = vmatprep.subr.mxu0 %v4124_v42  ;;  %v4169_v30 = vld [vmem:[%s5909_s9 + $0x28] sm:$0xff] }
0x15e2   : > { %5053 = vpow2.f32 %v3406_v25  ;;  %v3130_v32 = vmul.f32 %v5052_v29, %v5048_v7  ;;  %v4176_v29 = vld [vmem:[%s5911_s11 + $0x80] sm:$0xff] }
0x15e3   : > { %5055 = vpow2.f32 %v3404_v23 }
0x15e4   : > { %4561 = vmatprep.mubr.msk.f32.mxu0 %vm948_vm5, %v3130_v32  ;;  %v4177_v32 = vld [vmem:[%s5911_s11 + $0x88] sm:$0xff] }
0x15e5   : > { %4562 = vmatmul.mubr.msk.f32.vlgmr.msra.gmra.mrb[18].mxu0 %vm948_vm5, %v3131_v36  ;;  %v4802_v36 = vpack.c.bf16 %v4177_v32, %v4176_v29 }
0x15e6   : > { %4565 = vmatpush3.msra.mxu0 %v4124_v42  ;;  %v4181_v42 = vld [vmem:[%s5911_s11 + $0xa8] sm:$0xff] }
0x15ec   : > { %v5054_v37 = vpop.eup %5053 }
0x15ed   : > { %v3411_v39 = vsel %vm952_vm4, %v5054_v37, 0.0  ;;  %v5056_v40 = vpop.eup %5055 }
0x15ee   : > { %3412 = vadd.xlane.f32.xlu1 %v3411_v39  ;;  %v3408_v41 = vsel %vm948_vm5, %v5056_v40, 0.0  ;;  %v4179_v39 = vld [vmem:[%s5911_s11 + $0x98] sm:$0xff] }
0x15f2   : > { %3409 = vadd.xlane.f32.xlu1 %v3408_v41  ;;  %v4180_v41 = vld [vmem:[%s5911_s11 + $0xa0] sm:$0xff] }
0x1603   : > { %4977 = vrot.lane.b32.xlu1 %v5622_v35, %s5973_s1 }
0x167b   : > { %v3413_v43 = vpop.xlane.xlu1 %3412 }
0x167f   : > { %v3410_v44 = vpop.xlane.xlu1 %3409 }
0x1680   : > { %5057 = vrcp.f32 %v3410_v44  ;;  %v4182_v44 = vld [vmem:[%s5911_s11 + $0xb0] sm:$0xff] }
0x1681   : > { %5059 = vrcp.f32 %v3413_v43  ;;  %v4810_v43 = vpack.c.bf16 %v4181_v42, %v4180_v41 }
0x1683   : > { %v4978_v45 = vpop.permute.xlu1 %4977 }
0x1684   : > { %v4980_v46 = vunpack.i.h.bf16 %v4978_v45  ;;  %v4979_v47 = vunpack.i.l.bf16 %v4978_v45  ;;  %v4183_v45 = vld [vmem:[%s5911_s11 + $0xb8] sm:$0xff] }
0x1686   : > { %v4788_v48 = vpack.c.bf16 %v4980_v46, %v4979_v47  ;;  %v4814_v46 = vpack.c.bf16 %v4183_v45, %v4182_v44  ;;  %v4184_v47 = vld [vmem:[%s5911_s11 + $0xc0] sm:$0xff] }
0x1688   : > { %4790 = vmatprep.subr.msk.bf16.mxu0 %vm5408_vm8, %v4788_v48 }
0x168a   : > { %v5058_v49 = vpop.eup %5057 }
0x168b   : > { %v5060_v50 = vpop.eup %5059  ;;  %v3416_v51 = vmul.f32 %v5058_v49, %v5056_v40 }
0x168c   : > { %v3417_v52 = vmul.f32 %v5060_v50, %v5054_v37  ;;  %v4178_v37 = vld [vmem:[%s5911_s11 + $0x90] sm:$0xff] }
0x168d   : > { %v4806_v40 = vpack.c.bf16 %v4179_v39, %v4178_v37 }
0x16b8   : > { %v4563_v34 = vpop.f32.mrb[18].mxu0 }
0x16b9   : > { %v3211_v35 = vpop.f32.mrb[19].mxu0 }
0x16ba   : > { %4566 = vmatprep.mubr.msk.f32.mxu0 %vm862_vm2, %v3211_v35  ;;  %v4187_v35 = vld [vmem:[%s5911_s11 + $0xd8] sm:$0xff] }
0x16bb   : > { %4567 = vmatmul.mubr.msk.f32.vlgmr.msra.gmra.mrb[14].mxu0 %vm862_vm2, %v4563_v34  ;;  %v4186_v34 = vld [vmem:[%s5911_s11 + $0xd0] sm:$0xff] }
0x16bc   : > { %4793 = vmatpush3.bf16.msk.msra.mxu0 %vm5408_vm8, %v4788_v48  ;;  %4580 = vmatprep.mubr.msk.f32.mxu0 %vm948_vm5, %v3416_v51  ;;  %v4185_v48 = vld [vmem:[%s5911_s11 + $0xc8] sm:$0xff]  ;;  %v4822_v50 = vpack.c.bf16 %v4187_v35, %v4186_v34  ;;  %v4188_v51 = vld [vmem:[%s5911_s11 + $0xe0] sm:$0xff] }
0x16bd   : > { %4583 = vmatprep.subr.mxu0 %v4125_v31  ;;  %v4818_v49 = vpack.c.bf16 %v4185_v48, %v4184_v47 }
0x16bf   : > { %4581 = vmatmul.mubr.msk.f32.vlgmr.msra.gmra.mrb[20].mxu0 %vm948_vm5, %v3417_v52 }
0x16c0   : > { %4584 = vmatpush3.msra.mxu0 %v4125_v31  ;;  %v4189_v31 = vld [vmem:[%s5911_s11 + $0xe8] sm:$0xff] }
0x16c1   : > { %4803 = vmatprep.subr.bf16.mxu0 %v4802_v36  ;;  %v4826_v52 = vpack.c.bf16 %v4189_v31, %v4188_v51 }
0x1792   : > { %v4582_v53 = vpop.f32.mrb[20].mxu0 }
0x1793   : > { %v3497_v54 = vpop.f32.mrb[21].mxu0 }
0x1794   : > { %4585 = vmatprep.mubr.msk.f32.mxu0 %vm862_vm2, %v3497_v54  ;;  %v4191_v54 = vld [vmem:[%s5911_s11 + $0xf8] sm:$0xff] }
0x1795   : > { %4586 = vmatmul.mubr.msk.f32.vlgmr.msra.gmra.mrb[14].mxu0 %vm862_vm2, %v4582_v53  ;;  %v4190_v53 = vld [vmem:[%s5911_s11 + $0xf0] sm:$0xff] }
0x1796   : > { %4805 = vmatpush3.bf16.msra.mxu0 %v4802_v36 }
0x1797   : > { %4807 = vmatprep.subr.bf16.mxu0 %v4806_v40 }
0x179a   : > { %4809 = vmatpush3.bf16.msra.mxu0 %v4806_v40 }
0x179b   : > { %4811 = vmatprep.subr.bf16.mxu0 %v4810_v43 }
0x179e   : > { %4813 = vmatpush3.bf16.msra.mxu0 %v4810_v43 }
0x179f   : > { %4815 = vmatprep.subr.bf16.mxu0 %v4814_v46 }
0x17a2   : > { %4817 = vmatpush3.bf16.msra.mxu0 %v4814_v46 }
0x17a3   : > { %4819 = vmatprep.subr.bf16.mxu0 %v4818_v49 }
0x17a6   : > { %4821 = vmatpush3.bf16.msra.mxu0 %v4818_v49 }
0x17a7   : > { %4823 = vmatprep.subr.bf16.mxu0 %v4822_v50 }
0x17aa   : > { %4825 = vmatpush3.bf16.msra.mxu0 %v4822_v50  ;;  %v4193_v50 = vld [vmem:[%s5912_s12 + $0x1] ss:$0 sm:$0xff] }
0x17ab   : > { %4827 = vmatprep.subr.bf16.mxu0 %v4826_v52 }
0x17ae   : > { %4829 = vmatpush3.bf16.msra.mxu0 %v4826_v52 }
0x1868   : > { %v4587_v56 = vpop.f32.mrb[14].mxu0 }
0x1869   : > { %v4836_v0 = vadd.f32 %v4587_v56, %v4127_v55  ;;  %v3578_v57 = vpop.f32.mrb[15].mxu0  ;;  %v4173_v56 = vld [vmem:[%s5910_s10 + $0x1] ss:$0 sm:$0xff] }
0x186a   : > { %v4837_v58 = vadd.f32 %v4127_v55, %v3578_v57  ;;  %v4830_v55 = vpack.c.bf16 %v4191_v54, %v4190_v53 }
0x186b   : > { %v3590_v38 = vadd.f32 %v4836_v0, %v5607_v24 }
0x186c   : > { %v3589_v60 = vadd.f32 %v4837_v58, %v5603_v22  ;;  %v4168_v22 = vld [vmem:[%s5909_s9 + $0x20] sm:$0xff]  ;;  %4831 = vmatprep.subr.bf16.mxu0 %v4830_v55 }
0x186d   : > { %v3598_v59 = vsel %vm2009_vm9, %v3590_v38, 0.0  ;;  %v4794_v7 = vpack.c.bf16 %v4169_v30, %v4168_v22  ;;  %4833 = vmatpush3.bf16.msra.mxu0 %v4830_v55 }
0x186e   : > { %3599 = vadd.xlane.f32.xlu1 %v3598_v59  ;;  %v3595_v61 = vsel %vm653_vm0, %v3589_v60, 0.0 }
0x186f   : > { %3596 = vadd.xlane.f32.xlu0 %v3595_v61  ;;  %4795 = vmatprep.subr.bf16.mxu1 %v4794_v7 }
0x1870   : > { %4797 = vmatpush3.bf16.msra.mxu1 %v4794_v7 }
0x1871   : > { %4799 = vmatprep.subr.bf16.mxu1 %v4798_v27 }
0x1874   : > { %4801 = vmatpush3.bf16.msra.mxu1 %v4798_v27 }
0x18fb   : > { %v3600_v62 = vpop.xlane.xlu1 %3599 }
0x18fc   : > { %v3602_v63 = vmul.f32 0.03125, %v3600_v62  ;;  %v3597_v1 = vpop.xlane.xlu0 %3596 }
0x18fd   : > { %v3601_v2 = vmul.f32 0.03125, %v3597_v1 }
0x18fe   : > { %v3604_v3 = vsub.f32 %v3590_v38, %v3602_v63 }
0x18ff   : > { %v3603_v4 = vsub.f32 %v3589_v60, %v3601_v2 }
0x1900   : > { %v3606_v28 = vmul.f32 %v3604_v3, %v3604_v3 }
0x1901   : > { %v3605_v5 = vmul.f32 %v3603_v4, %v3603_v4 }
0x1902   : > { %v3610_v24 = vsel %vm2009_vm9, %v3606_v28, 0.0 }
0x1903   : > { %v3607_v6 = vsel %vm653_vm0, %v3605_v5, 0.0 }
0x1904   : > { %3608 = vadd.xlane.f32.xlu0 %v3607_v6 }
0x1908   : > { %3611 = vadd.xlane.f32.xlu0 %v3610_v24 }
0x1991   : > { %v3609_v8 = vpop.xlane.xlu0 %3608 }
0x1992   : > { %v3613_v9 = vmul.f32 0.03125, %v3609_v8 }
0x1994   : > { %v3615_v10 = vadd.f32 1e-05, %v3613_v9 }
0x1995   : > { %v3612_v11 = vpop.xlane.xlu0 %3611 }
0x1996   : > { %5061 = vrsqrt.f32 %v3615_v10  ;;  %v3614_v12 = vmul.f32 0.03125, %v3612_v11 }
0x1998   : > { %v3616_v13 = vadd.f32 1e-05, %v3614_v12 }
0x199a   : > { %5063 = vrsqrt.f32 %v3616_v13 }
0x19a0   : > { %v5062_v14 = vpop.eup %5061 }
0x19a1   : > { %v3619_v16 = vmul.f32 %v5062_v14, %v3603_v4 }
0x19a3   : > { %v3627_v18 = vmul.f32 %v4166_v15, %v3619_v16 }
0x19a4   : > { %v5064_v19 = vpop.eup %5063 }
0x19a5   : > { %v3620_v20 = vmul.f32 %v5064_v19, %v3604_v3  ;;  %v5763_v21 = vadd.f32 %v4167_v17, %v3627_v18 }
0x19a7   : > { %v3628_v23 = vmul.f32 %v4166_v15, %v3620_v20  ;;  %4596 = vmatprep.mubr.msk.f32.mxu1 %vm653_vm0, %v5763_v21 }
0x19a9   : > { %v5767_v25 = vadd.f32 %v4167_v17, %v3628_v23 }
0x19ab   : > { %4597 = vmatmul.mubr.msk.f32.vlgmr.msra.gmra.mrb[24].mxu1 %vm653_vm0, %v5767_v25 }
0x1a7e   : > { %v4598_v0 = vpop.f32.mrb[24].mxu1 }
0x1a7f   : > { %v3728_v57 = vadd.f32 %v4598_v0, %v4173_v56  ;;  %v3722_v58 = vpop.f32.mrb[25].mxu1 }
0x1a80   : > { %v3723_v38 = vadd.f32 %v4173_v56, %v3722_v58 }
0x1a81   : > { %v3734_v60 = vmul.f32 0.70710677, %v3728_v57  ;;  %v3732_v49 = vmul.f32 0.5, %v3728_v57 }
0x1a82   : > { %v3733_v59 = vmul.f32 0.70710677, %v3723_v38  ;;  %v3731_v47 = vmul.f32 0.5, %v3723_v38 }
0x1a83   : > { %v3736_v61 = vand.u32 2147483647, %v3734_v60  ;;  %vm3776_vm12 = vcmp.lt.f32.partialorder %v3734_v60, 0.0 }
0x1a84   : > { %v3735_v62 = vand.u32 2147483647, %v3733_v59  ;;  %vm3775_vm13 = vcmp.lt.f32.partialorder %v3733_v59, 0.0 }
0x1a85   : > { %v3738_v63 = vmul.f32 0.3275911, %v3736_v61  ;;  %v3764_v4 = vsub.f32 0.0, %v3736_v61 }
0x1a86   : > { %v3737_v1 = vmul.f32 0.3275911, %v3735_v62  ;;  %v3763_v5 = vsub.f32 0.0, %v3735_v62 }
0x1a87   : > { %v3740_v2 = vadd.f32 1.0, %v3738_v63  ;;  %v3766_v28 = vmul.f32 %v3764_v4, %v3736_v61 }
0x1a88   : > { %v3739_v3 = vadd.f32 1.0, %v3737_v1  ;;  %v3765_v30 = vmul.f32 %v3763_v5, %v3735_v62 }
0x1a89   : > { %5065 = vrcp.f32 %v3740_v2  ;;  %v3769_v26 = vmul.f32 1.442695, %v3766_v28 }
0x1a8a   : > { %5067 = vrcp.f32 %v3739_v3  ;;  %v3767_v9 = vmul.f32 1.442695, %v3765_v30 }
0x1a8b   : > { %5069 = vpow2.f32 %v3769_v26 }
0x1a8c   : > { %5071 = vpow2.f32 %v3767_v9 }
0x1a93   : > { %v5066_v6 = vpop.eup %5065 }
0x1a94   : > { %v5068_v24 = vpop.eup %5067  ;;  %v3746_v22 = vmul.f32 1.0614054, %v5066_v6 }
0x1a95   : > { %v3745_v7 = vmul.f32 1.0614054, %v5068_v24  ;;  %v5070_v29 = vpop.eup %5069 }
0x1a96   : > { %v3748_v33 = vadd.f32 -1.4531521, %v3746_v22  ;;  %v5072_v36 = vpop.eup %5071 }
0x1a97   : > { %v3747_v27 = vadd.f32 -1.4531521, %v3745_v7  ;;  %v4197_v7 = vld [vmem:[%s5916_s16 + $0x1] ss:$0 sm:$0xff] }
0x1a98   : > { %v3750_v8 = vmul.f32 %v5066_v6, %v3748_v33 }
0x1a99   : > { %v3749_v10 = vmul.f32 %v5068_v24, %v3747_v27 }
0x1a9a   : > { %v3752_v11 = vadd.f32 1.4214138, %v3750_v8 }
0x1a9b   : > { %v3751_v12 = vadd.f32 1.4214138, %v3749_v10 }
0x1a9c   : > { %v3754_v13 = vmul.f32 %v5066_v6, %v3752_v11 }
0x1a9d   : > { %v3753_v14 = vmul.f32 %v5068_v24, %v3751_v12 }
0x1a9e   : > { %v3756_v15 = vadd.f32 -0.28449672, %v3754_v13 }
0x1a9f   : > { %v3755_v16 = vadd.f32 -0.28449672, %v3753_v14 }
0x1aa0   : > { %v3758_v17 = vmul.f32 %v5066_v6, %v3756_v15 }
0x1aa1   : > { %v3757_v18 = vmul.f32 %v5068_v24, %v3755_v16 }
0x1aa2   : > { %v3760_v19 = vadd.f32 0.2548296, %v3758_v17 }
0x1aa3   : > { %v3759_v20 = vadd.f32 0.2548296, %v3757_v18 }
0x1aa4   : > { %v3762_v23 = vmul.f32 %v5066_v6, %v3760_v19 }
0x1aa5   : > { %v3761_v32 = vmul.f32 %v5068_v24, %v3759_v20  ;;  %v4196_v24 = vld [vmem:[%s5915_s15 + $0x1] ss:$0 sm:$0xff]  ;;  %v3935_v20 = vld [vmem:[%s5917_s17] sm:$0x1] }
0x1aa6   : > { %v3772_v37 = vmul.f32 %v5070_v29, %v3762_v23  ;;  %v3936_v29 = vld [vmem:[%s5918_s18] sm:$0x1] }
0x1aa7   : > { %v3771_v39 = vmul.f32 %v5072_v36, %v3761_v32 }
0x1aa8   : > { %v3774_v40 = vsub.f32 1.0, %v3772_v37 }
0x1aa9   : > { %v3773_v41 = vsub.f32 1.0, %v3771_v39 }
0x1aaa   : > { %v3778_v42 = vsub.f32 0.0, %v3774_v40 }
0x1aab   : > { %v3777_v43 = vsub.f32 0.0, %v3773_v41 }
0x1aac   : > { %v3780_v44 = vsel %vm3776_vm12, %v3778_v42, %v3774_v40 }
0x1aad   : > { %v3782_v45 = vadd.f32 1.0, %v3780_v44  ;;  %v3779_v46 = vsel %vm3775_vm13, %v3777_v43, %v3773_v41 }
0x1aae   : > { %v3781_v48 = vadd.f32 1.0, %v3779_v46 }
0x1aaf   : > { %v3784_v35 = vmul.f32 %v3782_v45, %v3732_v49 }
0x1ab0   : > { %v3783_v34 = vmul.f32 %v3781_v48, %v3731_v47 }
0x1ab2   : > { %4631 = vmatprep.mubr.f32.mxu0 %v3783_v34 }
0x1ab3   : > { %4632 = vmatmul.mubr.f32.vlgmr.msra.gmra.mrb[22].mxu0 %v3784_v35 }
0x1b86   : > { %v4633_v51 = vpop.f32.mrb[22].mxu0 }
0x1b87   : > { %v3882_v31 = vadd.f32 %v4633_v51, %v4193_v50  ;;  %v3876_v52 = vpop.f32.mrb[23].mxu0 }
0x1b88   : > { %v3877_v53 = vadd.f32 %v4193_v50, %v3876_v52 }
0x1b89   : > { %v3886_v54 = vadd.f32 %v3882_v31, %v5767_v25 }
0x1b8a   : > { %v3885_v55 = vadd.f32 %v3877_v53, %v5763_v21 }
0x1b8b   : > { %v3894_v56 = vsel %vm2009_vm9, %v3886_v54, 0.0 }
0x1b8c   : > { %3895 = vadd.xlane.f32.xlu0 %v3894_v56  ;;  %v3891_v0 = vsel %vm653_vm0, %v3885_v55, 0.0 }
0x1b8d   : > { %3892 = vadd.xlane.f32.xlu1 %v3891_v0 }
0x1c19   : > { %v3896_v57 = vpop.xlane.xlu0 %3895 }
0x1c1a   : > { %v3898_v58 = vmul.f32 0.03125, %v3896_v57  ;;  %v3893_v38 = vpop.xlane.xlu1 %3892 }
0x1c1b   : > { %v3897_v60 = vmul.f32 0.03125, %v3893_v38 }
0x1c1c   : > { %v3900_v59 = vsub.f32 %v3886_v54, %v3898_v58 }
0x1c1d   : > { %v3899_v61 = vsub.f32 %v3885_v55, %v3897_v60 }
0x1c1e   : > { %v3902_v62 = vmul.f32 %v3900_v59, %v3900_v59 }
0x1c1f   : > { %v3901_v63 = vmul.f32 %v3899_v61, %v3899_v61 }
0x1c20   : > { %v3906_v1 = vsel %vm2009_vm9, %v3902_v62, 0.0 }
0x1c21   : > { %3907 = vadd.xlane.f32.xlu0 %v3906_v1  ;;  %v3903_v25 = vsel %vm653_vm0, %v3901_v63, 0.0 }
0x1c22   : > { %3904 = vadd.xlane.f32.xlu1 %v3903_v25 }
0x1cae   : > { %v3908_v21 = vpop.xlane.xlu0 %3907 }
0x1caf   : > { %v3910_v2 = vmul.f32 0.03125, %v3908_v21  ;;  %v3905_v3 = vpop.xlane.xlu1 %3904 }
0x1cb0   : > { %v3909_v4 = vmul.f32 0.03125, %v3905_v3 }
0x1cb1   : > { %v3912_v5 = vadd.f32 1e-05, %v3910_v2 }
0x1cb2   : > { %v3911_v6 = vadd.f32 1e-05, %v3909_v4 }
0x1cb3   : > { %5073 = vrsqrt.f32 %v3912_v5 }
0x1cb4   : > { %5075 = vrsqrt.f32 %v3911_v6 }
0x1cbd   : > { %v5074_v28 = vpop.eup %5073 }
0x1cbe   : > { %v5076_v22 = vpop.eup %5075  ;;  %v3916_v30 = vmul.f32 %v5074_v28, %v3900_v59 }
0x1cbf   : > { %v3915_v33 = vmul.f32 %v5076_v22, %v3899_v61 }
0x1cc0   : > { %v3924_v26 = vmul.f32 %v4196_v24, %v3916_v30 }
0x1cc1   : > { %v3923_v27 = vmul.f32 %v4196_v24, %v3915_v33 }
0x1cc2   : > { %v3932_v8 = vadd.f32 %v4197_v7, %v3924_v26 }
0x1cc3   : > { %v3931_v9 = vadd.f32 %v4197_v7, %v3923_v27 }
0x1cc4   : > { %v3937_v10 = vsel %vm2009_vm9, %v3932_v8, 0.0  ;;  %3934 = vst.msk [vmem:[%s639_s3 + $0x8] sm:$0x1] %vm2009_vm9, %v3932_v8 }
0x1cc5   : > { %3938 = vadd.xlane.f32.xlu0 %v3937_v10  ;;  %3933 = vst.msk [vmem:[%s639_s3] sm:$0xff] %vm653_vm0, %v3931_v9  ;;  %s5857_s3 = scalar_lea.hbm %s5920_s20, %s4198_s30 }
0x1d52   : > { %v3939_v11 = vpop.xlane.xlu0 %3938 }
0x1d53   : > { %v3940_v12 = vmul.f32 0.03125, %v3939_v11 }
0x1d55   : > { %v3941_v13 = vsub.f32 %v3932_v8, %v3940_v12 }
0x1d57   : > { %v3942_v14 = vmul.f32 %v3941_v13, %v3941_v13 }
0x1d59   : > { %v3943_v15 = vsel %vm2009_vm9, %v3942_v14, 0.0 }
0x1d5a   : > { %3944 = vadd.xlane.f32.xlu0 %v3943_v15 }
0x1de7   : > { %v3945_v16 = vpop.xlane.xlu0 %3944 }
0x1de8   : > { %v3946_v17 = vmul.f32 0.03125, %v3945_v16 }
0x1dea   : > { %v3947_v18 = vadd.f32 1e-05, %v3946_v17 }
0x1dec   : > { %5077 = vrsqrt.f32 %v3947_v18 }
0x1df6   : > { %v5078_v19 = vpop.eup %5077 }
0x1df7   : > { %v3949_v23 = vmul.f32 %v5078_v19, %v3941_v13 }
0x1df9   : > { %v3950_v32 = vmul.f32 %v3949_v23, %v3935_v20 }
0x1dfb   : > { %v3951_v36 = vadd.f32 %v3950_v32, %v3936_v29 }
0x1dfd   : > { %3952 = vst.msk [vmem:[%s629_s23] sm:$0x1] %vm2009_vm9, %v3951_v36 }
0x1dfe   : > { %5092 = shalt.err (!%p5089_p3)
}
0x1dff   : > { %s5093_s29 = scalar_lea.hbm %s5857_s3, 16  ;;  %s5097_s1 = scalar_lea.hbm %s5920_s20, 32 }
0x1e00   : > { %p5094_p4 = scmp.ne.s32.totalorder %s5857_s3, %s5093_s29  ;;  %p5098_p9 = scmp.lt.u32.totalorder %s5857_s3, %s5920_s20 }
0x1e01   : > { %p5099_p10 = scmp.lt.u32.totalorder %s5097_s1, %s5093_s29  ;;  %p5101_p12 = scmp.lt.u32.totalorder %s5093_s29, %s5857_s3 }
0x1e02   : > { %p5095_p7 = pnand %p5094_p4, %p5299_p5 }
0x1e03   : > { %p5100_p11 = por %p5099_p10, %p5098_p9 }
0x1e04   : > { %p5096_p8 = pneg %p5095_p7 }
0x1e05   : > { %p5102_p13 = por %p5101_p12, %p5100_p11 }
0x1e07   : > { %p5103_p0 = pnand %p5102_p13, %p5096_p8 }
0x1e09   : > { %5106 = shalt.err (!%p5103_p0)
}
0x1e0a   : > { %4850 = dma.vmem_to_hbm [thread:$0]  (%p5299_p5), %s5859_s0, 16, %s5857_s3, %s3959_s28  }
0x1e0b PF: > { %s5975_s27 = sld [smem:[#allocation7_spill]]  ;;  %s5976_s24 = sld [smem:[#allocation5_spill]] }
0x1e11   : > { %p4856_p1 = scmp.ge.s32.totalorder %s5975_s27, 2  ;;  %s3994_s30 = sand.u32 1, %s5976_s24  }
0x1e12   : > { %s3995_s23 = scalar_lea.sflag [#allocation3], %s3994_s30 }
0x1e13   : > { %p4853_p2 = pnand %p4856_p1, %p5303_p6 }
0x1e15   : > { %5124 = dma.done.wait (!%p4853_p2), %s3995_s23, 16  }
0x1e16   : > { %5126 = vsyncadd (!%p4853_p2), %s3995_s23, 4294967280  ;;  %s5978_s24 = sld [smem:[#allocation8_spill]]  ;;  %s5979_s29 = sld [smem:[#allocation6_spill]] }
0x1e17   : > { %s5980_s23 = sld [smem:[#allocation9_spill]]  ;;  %s5981_s1 = smov %s5133_s22 }
0x1e1c   : > { %p31_p3 = scmp.ge.s32.totalorder %s5978_s24, 4   ;;  %s5982_s22 = smov %s5979_s29 }
0x1e1e   :  { %33 = sbr.rel (!%p31_p3) target bundleno = 9 (0x9), region = 155 }
0x1e25   :  { %3999 = vsyncpa [#allocation3], 1 }
0x1e26   :  { %4001 = vsyncpa [#allocation3 + $0x1], 1 }

</bundles_post_ra>
